<compile_context>
chip_gen: v7x
topology: tpu7x:2x2x1
jax: 0.10.0
libtpu: 0.0.40
codegen_flags: <defaults>
</compile_context>

<pallas_src>
import functools
import math

import jax
import jax.numpy as jnp
from jax.experimental import pallas as pl
from jax.experimental.pallas import tpu as pltpu


# ----------------------------------------------------------------------------
# Pallas kernels
# ----------------------------------------------------------------------------

def _conv_bn_relu_kernel(w_ref, col_ref, scale_ref, bias_ref, o_ref):
    """o = relu((w @ col) * scale + bias).

    w: (Cout, K) bf16, col: (K, tm) bf16, scale/bias: (Cout, 1) f32.
    Output block is (Cout, tm): the lane dimension is the flattened batch*spatial
    extent (lane-dense for the big layers), so stores are unmasked vst.
    """
    acc = jnp.dot(w_ref[...], col_ref[...], preferred_element_type=jnp.float32)
    out = acc * scale_ref[...] + bias_ref[...]
    o_ref[...] = jnp.maximum(out, 0.0).astype(o_ref.dtype)


def _attention_kernel(q_ref, k_ref, v_ref, vec_ref, prob_ref):
    """Attention with a shared, pre-scaled query over a block of batch elements.

    q: (T, E) bf16 (already multiplied by 1/sqrt(E), identical for every batch),
    k: (Nb, E, HW) bf16, v: (Nb, HW, E) bf16.  Matmuls accumulate in f32,
    softmax runs in f32, reciprocal goes to the EUP slot.
    """
    q = q_ref[...]
    nb = k_ref.shape[0]
    for b in range(nb):                                        # static unroll
        s = jnp.dot(q, k_ref[b], preferred_element_type=jnp.float32)
        m = jnp.max(s, axis=-1, keepdims=True)
        p = jnp.exp(s - m)
        p = p * pl.reciprocal(jnp.sum(p, axis=-1, keepdims=True), approx=True)
        vec_ref[b] = jnp.dot(p.astype(v_ref.dtype), v_ref[b],
                             preferred_element_type=jnp.float32).astype(vec_ref.dtype)
        prob_ref[b] = p.astype(prob_ref.dtype)


# ----------------------------------------------------------------------------
# Tiling helpers
# ----------------------------------------------------------------------------

def _pick_tile_m(M):
    """Largest lane-aligned tile (multiple of 128) that still yields >= 2 grid
    steps (keeps both v7x TensorCores busy); falls back to the full extent."""
    for tm in (2048, 1024, 512, 256, 128):
        if M % tm == 0 and M // tm >= 2:
            return tm
    return M


def _pick_batch_block(N):
    """Batch elements per attention grid step: amortize per-step overhead while
    keeping >= 2 grid steps when possible (v7x megacore)."""
    for nb in (8, 4, 2):
        if N % nb == 0 and N // nb >= 2:
            return nb
    return 1


# ----------------------------------------------------------------------------
# Kernel wrappers
# ----------------------------------------------------------------------------

def im2col_cf(x_cf, stride, k=3, pad=1):
    """x (C, N, H, W) -> ((C*k*k, N*Ho*Wo) bf16, N, Ho, Wo).

    Row order is (cin, kh, kw) — matches PyTorch weight.reshape(Cout, Cin*k*k);
    column order is (n, ho, wo) row-major.  Because channels already lead, the
    reshape is contiguous: no transpose is materialized."""
    C, N, H, W = x_cf.shape
    sh, sw = stride
    Ho = (H + 2 * pad - k) // sh + 1
    Wo = (W + 2 * pad - k) // sw + 1
    xp = jnp.pad(x_cf, ((0, 0), (0, 0), (pad, pad), (pad, pad)))
    patches = []
    for i in range(k):
        for j in range(k):
            patches.append(xp[:, :, i:i + sh * Ho:sh, j:j + sw * Wo:sw])
    col = jnp.stack(patches, axis=1)                 # (C, k*k, N, Ho, Wo)
    return col.reshape(C * k * k, N * Ho * Wo).astype(jnp.bfloat16), N, Ho, Wo


def conv_bn_relu(x_cf, params, stride):
    """Conv2d(k=3, p=1, stride) + BatchNorm2d(eval) + ReLU on channels-first-
    flattened activations: x_cf (Cin, N, H, W) bf16 -> (Cout, N, Ho, Wo) bf16."""
    w, b, gamma, beta, mean, var = params
    cout = w.shape[0]
    col, N, Ho, Wo = im2col_cf(x_cf, stride)         # (Cin*9, N*Ho*Wo) bf16
    K, M = col.shape
    wmat = w.reshape(cout, K).astype(jnp.bfloat16)
    inv_std = gamma / jnp.sqrt(var + 1e-5)
    scale = inv_std.reshape(cout, 1).astype(jnp.float32)
    bias = ((b - mean) * inv_std + beta).reshape(cout, 1).astype(jnp.float32)
    tm = _pick_tile_m(M)
    out = pl.pallas_call(
        _conv_bn_relu_kernel,
        out_shape=jax.ShapeDtypeStruct((cout, M), jnp.bfloat16),
        grid=(M // tm,),
        in_specs=[
            pl.BlockSpec((cout, K), lambda i: (0, 0)),
            pl.BlockSpec((K, tm), lambda i: (0, i)),
            pl.BlockSpec((cout, 1), lambda i: (0, 0)),
            pl.BlockSpec((cout, 1), lambda i: (0, 0)),
        ],
        out_specs=pl.BlockSpec((cout, tm), lambda i: (0, i)),
        compiler_params=pltpu.CompilerParams(dimension_semantics=("parallel",)),
    )(wmat, col, scale, bias)
    return out.reshape(cout, N, Ho, Wo)


def position_attention_core(q2d, k_flat, v_flat):
    """q2d (T, E) bf16 shared across batch; k_flat (N, E, HW) bf16;
    v_flat (N, HW, E) bf16 -> (attn_vecs (N, T, E) f32, attn_probs (N, T, HW) f32)."""
    N, E, HW = k_flat.shape
    T = q2d.shape[0]
    nb = _pick_batch_block(N)
    return pl.pallas_call(
        _attention_kernel,
        out_shape=(jax.ShapeDtypeStruct((N, T, E), jnp.float32),
                   jax.ShapeDtypeStruct((N, T, HW), jnp.float32)),
        grid=(N // nb,),
        in_specs=[
            pl.BlockSpec((T, E), lambda b: (0, 0)),
            pl.BlockSpec((nb, E, HW), lambda b: (b, 0, 0)),
            pl.BlockSpec((nb, HW, E), lambda b: (b, 0, 0)),
        ],
        out_specs=(pl.BlockSpec((nb, T, E), lambda b: (b, 0, 0)),
                   pl.BlockSpec((nb, T, HW), lambda b: (b, 0, 0))),
        compiler_params=pltpu.CompilerParams(dimension_semantics=("parallel",)),
    )(q2d, k_flat, v_flat)


# ----------------------------------------------------------------------------
# JAX glue (upsample, positional encoding, params, forward)
# ----------------------------------------------------------------------------

def upsample_nearest_cf(x_cf, scale_factor=None, size=None):
    """nn.Upsample(mode='nearest') on channels-first-flattened (C, N, H, W)."""
    C, N, H, W = x_cf.shape
    if size is None:
        return jnp.repeat(jnp.repeat(x_cf, scale_factor, axis=2), scale_factor, axis=3)
    Ho, Wo = size
    ih = (jnp.arange(Ho) * H) // Ho
    iw = (jnp.arange(Wo) * W) // Wo
    return x_cf[:, :, ih][:, :, :, iw]


def positional_encoding(max_len, d_model):
    """Standard sinusoidal PositionalEncoding (dropout=0) -> (max_len, d_model) f32."""
    position = jnp.arange(max_len, dtype=jnp.float32)[:, None]
    div_term = jnp.exp(jnp.arange(0, d_model, 2, dtype=jnp.float32)
                       * (-math.log(10000.0) / d_model))
    pe = jnp.zeros((max_len, d_model), jnp.float32)
    pe = pe.at[:, 0::2].set(jnp.sin(position * div_term))
    pe = pe.at[:, 1::2].set(jnp.cos(position * div_term))
    return pe


def init_params(key, in_channels, num_channels):
    def conv_params(k, cin, cout):
        k1, k2, k3, k4 = jax.random.split(k, 4)
        w = jax.random.normal(k1, (cout, cin, 3, 3), jnp.float32) / math.sqrt(cin * 9)
        b = 0.01 * jax.random.normal(k2, (cout,), jnp.float32)
        gamma = 1.0 + 0.1 * jax.random.normal(k3, (cout,), jnp.float32)
        beta = 0.1 * jax.random.normal(k4, (cout,), jnp.float32)
        mean = jnp.zeros((cout,), jnp.float32)
        var = jnp.ones((cout,), jnp.float32)
        return (w, b, gamma, beta, mean, var)

    keys = jax.random.split(key, 10)
    enc_io = [(in_channels, num_channels)] + [(num_channels, num_channels)] * 3
    dec_io = [(num_channels, num_channels)] * 3 + [(num_channels, in_channels)]
    return {
        "enc": [conv_params(keys[i], ci, co) for i, (ci, co) in enumerate(enc_io)],
        "dec": [conv_params(keys[4 + i], ci, co) for i, (ci, co) in enumerate(dec_io)],
        "proj_w": jax.random.normal(keys[8], (in_channels, in_channels), jnp.float32)
                  / math.sqrt(in_channels),
        "proj_b": 0.01 * jax.random.normal(keys[9], (in_channels,), jnp.float32),
    }


def position_attention_forward(x, params, *, max_length, h, w):
    """x: (N, E, H, W) float32 NCHW. Returns (attn_vecs (N,T,E), attn_scores (N,T,H,W))."""
    N, E, H, W = x.shape

    # Single layout/dtype conversion at the boundary: NCHW f32 -> (C, N, H, W) bf16.
    x_cf = jnp.transpose(x, (1, 0, 2, 3)).astype(jnp.bfloat16)

    # U-net key encoder/decoder with skip adds (channels-first-flattened throughout).
    k = x_cf
    features = []
    enc_strides = [(1, 2), (2, 2), (2, 2), (2, 2)]
    for p, strd in zip(params["enc"], enc_strides):
        k = conv_bn_relu(k, p, strd)
        features.append(k)
    for i in range(3):
        k = upsample_nearest_cf(k, scale_factor=2)
        k = conv_bn_relu(k, params["dec"][i], (1, 1))
        k = k + features[2 - i]
    k = upsample_nearest_cf(k, size=(h, w))
    k = conv_bn_relu(k, params["dec"][3], (1, 1))            # (E, N, h, w)

    # Batch-independent query: positional encoding of zeros -> Linear -> pre-scale
    # by 1/sqrt(E).  Computed once as a tiny (T, E) matmul shared by every batch.
    pe = positional_encoding(max_length, E)                  # (T, E)
    q2d = (jnp.dot(pe, params["proj_w"].T) + params["proj_b"]) / math.sqrt(E)
    q2d = q2d.astype(jnp.bfloat16)

    # Boundary conversions for the attention core.
    k_flat = jnp.transpose(k, (1, 0, 2, 3)).reshape(N, E, h * w)                 # (N, E, h*w)
    v_flat = jnp.transpose(x, (0, 2, 3, 1)).reshape(N, H * W, E).astype(jnp.bfloat16)

    attn_vecs, attn_probs = position_attention_core(q2d, k_flat, v_flat)
    return attn_vecs, attn_probs.reshape(N, -1, H, W)


if __name__ == "__main__":
    # Small but consistent shapes: in_channels E=32, num_channels=16, (H,W)=(h,w)=(8,32).
    N, E, H, W = 2, 32, 8, 32
    num_channels = 16
    max_length = 8

    key = jax.random.PRNGKey(0)
    kx, kp = jax.random.split(key)
    x = jax.random.normal(kx, (N, E, H, W), jnp.float32)
    params = init_params(kp, E, num_channels)

    fwd = jax.jit(functools.partial(position_attention_forward,
                                    max_length=max_length, h=H, w=W))
    attn_vecs, attn_scores = fwd(x, params)
    jax.block_until_ready((attn_vecs, attn_scores))

    assert attn_vecs.shape == (N, max_length, E)
    assert attn_scores.shape == (N, max_length, H, W)
    assert bool(jnp.all(jnp.isfinite(attn_vecs))) and bool(jnp.all(jnp.isfinite(attn_scores)))
    # Softmax rows must sum to ~1 (looser tolerance: bf16 operands + approx reciprocal).
    assert bool(jnp.allclose(attn_scores.reshape(N, max_length, -1).sum(-1), 1.0, atol=5e-3))
    print("KERNEL_OK")
</pallas_src>

<mosaic_0001>
module attributes {stable_mosaic.version = 11 : i64} {
  func.func @_conv_bn_relu_kernel(%arg0: i32, %arg1: memref<16x288xbf16, #tpu.memory_space<vmem>>, %arg2: memref<288x128xbf16, #tpu.memory_space<vmem>>, %arg3: memref<16x1xf32, #tpu.memory_space<vmem>>, %arg4: memref<16x1xf32, #tpu.memory_space<vmem>>, %arg5: memref<16x128xbf16, #tpu.memory_space<vmem>>) attributes {dimension_semantics = [#tpu.dimension_semantics<parallel>], iteration_bounds = array<i64: 2>, scalar_prefetch = 0 : i64, scratch_operands = 0 : i64, tpu.core_type = #tpu.core_type<tc>, window_params = [{pipeline_mode = #tpu.pipeline_mode<synchronous>, transform_indices = @transform_0, window_bounds = array<i64: 16, 288>}, {transform_indices = @transform_1, window_bounds = array<i64: 288, 128>}, {pipeline_mode = #tpu.pipeline_mode<synchronous>, transform_indices = @transform_2, window_bounds = array<i64: 16, 1>}, {pipeline_mode = #tpu.pipeline_mode<synchronous>, transform_indices = @transform_3, window_bounds = array<i64: 16, 1>}, {transform_indices = @transform_4, window_bounds = array<i64: 16, 128>}]} {
    %c0 = arith.constant 0 : index
    %c0_0 = arith.constant 0 : index
    %0 = vector.load %arg1[%c0, %c0_0] : memref<16x288xbf16, #tpu.memory_space<vmem>>, vector<16x288xbf16>
    %c0_1 = arith.constant 0 : index
    %c0_2 = arith.constant 0 : index
    %1 = vector.load %arg2[%c0_1, %c0_2] : memref<288x128xbf16, #tpu.memory_space<vmem>>, vector<288x128xbf16>
    %cst = arith.constant dense<0.000000e+00> : vector<16x128xf32>
    %2 = tpu.matmul %0, %1, %cst {dimension_numbers = #tpu.dot_dimension_numbers<[1], [0], [0], [1], [0, 0, 1, 1], [], []>} : vector<16x288xbf16>, vector<288x128xbf16>, vector<16x128xf32> -> vector<16x128xf32>
    %c0_3 = arith.constant 0 : index
    %c0_4 = arith.constant 0 : index
    %3 = vector.load %arg3[%c0_3, %c0_4] : memref<16x1xf32, #tpu.memory_space<vmem>>, vector<16x1xf32>
    %4 = vector.broadcast %3 : vector<16x1xf32> to vector<16x128xf32>
    %5 = arith.mulf %2, %4 : vector<16x128xf32>
    %c0_5 = arith.constant 0 : index
    %c0_6 = arith.constant 0 : index
    %6 = vector.load %arg4[%c0_5, %c0_6] : memref<16x1xf32, #tpu.memory_space<vmem>>, vector<16x1xf32>
    %7 = vector.broadcast %6 : vector<16x1xf32> to vector<16x128xf32>
    %8 = arith.addf %5, %7 : vector<16x128xf32>
    %cst_7 = arith.constant 0.000000e+00 : f32
    %9 = vector.broadcast %cst_7 : f32 to vector<16x128xf32>
    %10 = arith.maximumf %8, %9 : vector<16x128xf32>
    %11 = arith.truncf %10 : vector<16x128xf32> to vector<16x128xbf16>
    %c0_8 = arith.constant 0 : index
    %c0_9 = arith.constant 0 : index
    %12 = vector.load %arg5[%c0_8, %c0_9] : memref<16x128xbf16, #tpu.memory_space<vmem>>, vector<16x128xbf16>
    tpu.vector_store %arg5[%c0_8, %c0_9], %11 {strides = array<i32>} : memref<16x128xbf16, #tpu.memory_space<vmem>>, vector<16x128xbf16>,
    return
  }
  func.func @transform_0(%arg0: i32) -> (i32, i32) {
    %c0_i32 = arith.constant 0 : i32
    %c0_i32_0 = arith.constant 0 : i32
    %c0_i32_1 = arith.constant 0 : i32
    return %c0_i32, %c0_i32_0 : i32, i32
  }
  func.func @transform_1(%arg0: i32) -> (i32, i32) {
    %c0_i32 = arith.constant 0 : i32
    %c0_i32_0 = arith.constant 0 : i32
    return %c0_i32, %arg0 : i32, i32
  }
  func.func @transform_2(%arg0: i32) -> (i32, i32) {
    %c0_i32 = arith.constant 0 : i32
    %c0_i32_0 = arith.constant 0 : i32
    %c0_i32_1 = arith.constant 0 : i32
    return %c0_i32, %c0_i32_0 : i32, i32
  }
  func.func @transform_3(%arg0: i32) -> (i32, i32) {
    %c0_i32 = arith.constant 0 : i32
    %c0_i32_0 = arith.constant 0 : i32
    %c0_i32_1 = arith.constant 0 : i32
    return %c0_i32, %c0_i32_0 : i32, i32
  }
  func.func @transform_4(%arg0: i32) -> (i32, i32) {
    %c0_i32 = arith.constant 0 : i32
    %c0_i32_0 = arith.constant 0 : i32
    return %c0_i32, %arg0 : i32, i32
  }
}

module attributes {stable_mosaic.version = 11 : i64} {
  func.func @_conv_bn_relu_kernel(%arg0: i32, %arg1: memref<16x144xbf16, #tpu.memory_space<vmem>>, %arg2: memref<144x64xbf16, #tpu.memory_space<vmem>>, %arg3: memref<16x1xf32, #tpu.memory_space<vmem>>, %arg4: memref<16x1xf32, #tpu.memory_space<vmem>>, %arg5: memref<16x64xbf16, #tpu.memory_space<vmem>>) attributes {dimension_semantics = [#tpu.dimension_semantics<parallel>], iteration_bounds = array<i64: 1>, scalar_prefetch = 0 : i64, scratch_operands = 0 : i64, tpu.core_type = #tpu.core_type<tc>, window_params = [{pipeline_mode = #tpu.pipeline_mode<synchronous>, transform_indices = @transform_0, window_bounds = array<i64: 16, 144>}, {transform_indices = @transform_1, window_bounds = array<i64: 144, 64>}, {pipeline_mode = #tpu.pipeline_mode<synchronous>, transform_indices = @transform_2, window_bounds = array<i64: 16, 1>}, {pipeline_mode = #tpu.pipeline_mode<synchronous>, transform_indices = @transform_3, window_bounds = array<i64: 16, 1>}, {transform_indices = @transform_4, window_bounds = array<i64: 16, 64>}]} {
    %c0 = arith.constant 0 : index
    %c0_0 = arith.constant 0 : index
    %0 = vector.load %arg1[%c0, %c0_0] : memref<16x144xbf16, #tpu.memory_space<vmem>>, vector<16x144xbf16>
    %c0_1 = arith.constant 0 : index
    %c0_2 = arith.constant 0 : index
    %1 = vector.load %arg2[%c0_1, %c0_2] : memref<144x64xbf16, #tpu.memory_space<vmem>>, vector<144x64xbf16>
    %cst = arith.constant dense<0.000000e+00> : vector<16x64xf32>
    %2 = tpu.matmul %0, %1, %cst {dimension_numbers = #tpu.dot_dimension_numbers<[1], [0], [0], [1], [0, 0, 1, 1], [], []>} : vector<16x144xbf16>, vector<144x64xbf16>, vector<16x64xf32> -> vector<16x64xf32>
    %c0_3 = arith.constant 0 : index
    %c0_4 = arith.constant 0 : index
    %3 = vector.load %arg3[%c0_3, %c0_4] : memref<16x1xf32, #tpu.memory_space<vmem>>, vector<16x1xf32>
    %4 = vector.broadcast %3 : vector<16x1xf32> to vector<16x64xf32>
    %5 = arith.mulf %2, %4 : vector<16x64xf32>
    %c0_5 = arith.constant 0 : index
    %c0_6 = arith.constant 0 : index
    %6 = vector.load %arg4[%c0_5, %c0_6] : memref<16x1xf32, #tpu.memory_space<vmem>>, vector<16x1xf32>
    %7 = vector.broadcast %6 : vector<16x1xf32> to vector<16x64xf32>
    %8 = arith.addf %5, %7 : vector<16x64xf32>
    %cst_7 = arith.constant 0.000000e+00 : f32
    %9 = vector.broadcast %cst_7 : f32 to vector<16x64xf32>
    %10 = arith.maximumf %8, %9 : vector<16x64xf32>
    %11 = arith.truncf %10 : vector<16x64xf32> to vector<16x64xbf16>
    %c0_8 = arith.constant 0 : index
    %c0_9 = arith.constant 0 : index
    %12 = vector.load %arg5[%c0_8, %c0_9] : memref<16x64xbf16, #tpu.memory_space<vmem>>, vector<16x64xbf16>
    tpu.vector_store %arg5[%c0_8, %c0_9], %11 {strides = array<i32>} : memref<16x64xbf16, #tpu.memory_space<vmem>>, vector<16x64xbf16>,
    return
  }
  func.func @transform_0(%arg0: i32) -> (i32, i32) {
    %c0_i32 = arith.constant 0 : i32
    %c0_i32_0 = arith.constant 0 : i32
    %c0_i32_1 = arith.constant 0 : i32
    return %c0_i32, %c0_i32_0 : i32, i32
  }
  func.func @transform_1(%arg0: i32) -> (i32, i32) {
    %c0_i32 = arith.constant 0 : i32
    %c0_i32_0 = arith.constant 0 : i32
    return %c0_i32, %arg0 : i32, i32
  }
  func.func @transform_2(%arg0: i32) -> (i32, i32) {
    %c0_i32 = arith.constant 0 : i32
    %c0_i32_0 = arith.constant 0 : i32
    %c0_i32_1 = arith.constant 0 : i32
    return %c0_i32, %c0_i32_0 : i32, i32
  }
  func.func @transform_3(%arg0: i32) -> (i32, i32) {
    %c0_i32 = arith.constant 0 : i32
    %c0_i32_0 = arith.constant 0 : i32
    %c0_i32_1 = arith.constant 0 : i32
    return %c0_i32, %c0_i32_0 : i32, i32
  }
  func.func @transform_4(%arg0: i32) -> (i32, i32) {
    %c0_i32 = arith.constant 0 : i32
    %c0_i32_0 = arith.constant 0 : i32
    return %c0_i32, %arg0 : i32, i32
  }
}

module attributes {stable_mosaic.version = 11 : i64} {
  func.func @_conv_bn_relu_kernel(%arg0: i32, %arg1: memref<16x144xbf16, #tpu.memory_space<vmem>>, %arg2: memref<144x16xbf16, #tpu.memory_space<vmem>>, %arg3: memref<16x1xf32, #tpu.memory_space<vmem>>, %arg4: memref<16x1xf32, #tpu.memory_space<vmem>>, %arg5: memref<16x16xbf16, #tpu.memory_space<vmem>>) attributes {dimension_semantics = [#tpu.dimension_semantics<parallel>], iteration_bounds = array<i64: 1>, scalar_prefetch = 0 : i64, scratch_operands = 0 : i64, tpu.core_type = #tpu.core_type<tc>, window_params = [{pipeline_mode = #tpu.pipeline_mode<synchronous>, transform_indices = @transform_0, window_bounds = array<i64: 16, 144>}, {transform_indices = @transform_1, window_bounds = array<i64: 144, 16>}, {pipeline_mode = #tpu.pipeline_mode<synchronous>, transform_indices = @transform_2, window_bounds = array<i64: 16, 1>}, {pipeline_mode = #tpu.pipeline_mode<synchronous>, transform_indices = @transform_3, window_bounds = array<i64: 16, 1>}, {transform_indices = @transform_4, window_bounds = array<i64: 16, 16>}]} {
    %c0 = arith.constant 0 : index
    %c0_0 = arith.constant 0 : index
    %0 = vector.load %arg1[%c0, %c0_0] : memref<16x144xbf16, #tpu.memory_space<vmem>>, vector<16x144xbf16>
    %c0_1 = arith.constant 0 : index
    %c0_2 = arith.constant 0 : index
    %1 = vector.load %arg2[%c0_1, %c0_2] : memref<144x16xbf16, #tpu.memory_space<vmem>>, vector<144x16xbf16>
    %cst = arith.constant dense<0.000000e+00> : vector<16x16xf32>
    %2 = tpu.matmul %0, %1, %cst {dimension_numbers = #tpu.dot_dimension_numbers<[1], [0], [0], [1], [0, 0, 1, 1], [], []>} : vector<16x144xbf16>, vector<144x16xbf16>, vector<16x16xf32> -> vector<16x16xf32>
    %c0_3 = arith.constant 0 : index
    %c0_4 = arith.constant 0 : index
    %3 = vector.load %arg3[%c0_3, %c0_4] : memref<16x1xf32, #tpu.memory_space<vmem>>, vector<16x1xf32>
    %4 = vector.broadcast %3 : vector<16x1xf32> to vector<16x16xf32>
    %5 = arith.mulf %2, %4 : vector<16x16xf32>
    %c0_5 = arith.constant 0 : index
    %c0_6 = arith.constant 0 : index
    %6 = vector.load %arg4[%c0_5, %c0_6] : memref<16x1xf32, #tpu.memory_space<vmem>>, vector<16x1xf32>
    %7 = vector.broadcast %6 : vector<16x1xf32> to vector<16x16xf32>
    %8 = arith.addf %5, %7 : vector<16x16xf32>
    %cst_7 = arith.constant 0.000000e+00 : f32
    %9 = vector.broadcast %cst_7 : f32 to vector<16x16xf32>
    %10 = arith.maximumf %8, %9 : vector<16x16xf32>
    %11 = arith.truncf %10 : vector<16x16xf32> to vector<16x16xbf16>
    %c0_8 = arith.constant 0 : index
    %c0_9 = arith.constant 0 : index
    %12 = vector.load %arg5[%c0_8, %c0_9] : memref<16x16xbf16, #tpu.memory_space<vmem>>, vector<16x16xbf16>
    tpu.vector_store %arg5[%c0_8, %c0_9], %11 {strides = array<i32>} : memref<16x16xbf16, #tpu.memory_space<vmem>>, vector<16x16xbf16>,
    return
  }
  func.func @transform_0(%arg0: i32) -> (i32, i32) {
    %c0_i32 = arith.constant 0 : i32
    %c0_i32_0 = arith.constant 0 : i32
    %c0_i32_1 = arith.constant 0 : i32
    return %c0_i32, %c0_i32_0 : i32, i32
  }
  func.func @transform_1(%arg0: i32) -> (i32, i32) {
    %c0_i32 = arith.constant 0 : i32
    %c0_i32_0 = arith.constant 0 : i32
    return %c0_i32, %arg0 : i32, i32
  }
  func.func @transform_2(%arg0: i32) -> (i32, i32) {
    %c0_i32 = arith.constant 0 : i32
    %c0_i32_0 = arith.constant 0 : i32
    %c0_i32_1 = arith.constant 0 : i32
    return %c0_i32, %c0_i32_0 : i32, i32
  }
  func.func @transform_3(%arg0: i32) -> (i32, i32) {
    %c0_i32 = arith.constant 0 : i32
    %c0_i32_0 = arith.constant 0 : i32
    %c0_i32_1 = arith.constant 0 : i32
    return %c0_i32, %c0_i32_0 : i32, i32
  }
  func.func @transform_4(%arg0: i32) -> (i32, i32) {
    %c0_i32 = arith.constant 0 : i32
    %c0_i32_0 = arith.constant 0 : i32
    return %c0_i32, %arg0 : i32, i32
  }
}

module attributes {stable_mosaic.version = 11 : i64} {
  func.func @_conv_bn_relu_kernel(%arg0: i32, %arg1: memref<16x144xbf16, #tpu.memory_space<vmem>>, %arg2: memref<144x4xbf16, #tpu.memory_space<vmem>>, %arg3: memref<16x1xf32, #tpu.memory_space<vmem>>, %arg4: memref<16x1xf32, #tpu.memory_space<vmem>>, %arg5: memref<16x4xbf16, #tpu.memory_space<vmem>>) attributes {dimension_semantics = [#tpu.dimension_semantics<parallel>], iteration_bounds = array<i64: 1>, scalar_prefetch = 0 : i64, scratch_operands = 0 : i64, tpu.core_type = #tpu.core_type<tc>, window_params = [{pipeline_mode = #tpu.pipeline_mode<synchronous>, transform_indices = @transform_0, window_bounds = array<i64: 16, 144>}, {transform_indices = @transform_1, window_bounds = array<i64: 144, 4>}, {pipeline_mode = #tpu.pipeline_mode<synchronous>, transform_indices = @transform_2, window_bounds = array<i64: 16, 1>}, {pipeline_mode = #tpu.pipeline_mode<synchronous>, transform_indices = @transform_3, window_bounds = array<i64: 16, 1>}, {transform_indices = @transform_4, window_bounds = array<i64: 16, 4>}]} {
    %c0 = arith.constant 0 : index
    %c0_0 = arith.constant 0 : index
    %0 = vector.load %arg1[%c0, %c0_0] : memref<16x144xbf16, #tpu.memory_space<vmem>>, vector<16x144xbf16>
    %c0_1 = arith.constant 0 : index
    %c0_2 = arith.constant 0 : index
    %1 = vector.load %arg2[%c0_1, %c0_2] : memref<144x4xbf16, #tpu.memory_space<vmem>>, vector<144x4xbf16>
    %cst = arith.constant dense<0.000000e+00> : vector<16x4xf32>
    %2 = tpu.matmul %0, %1, %cst {dimension_numbers = #tpu.dot_dimension_numbers<[1], [0], [0], [1], [0, 0, 1, 1], [], []>} : vector<16x144xbf16>, vector<144x4xbf16>, vector<16x4xf32> -> vector<16x4xf32>
    %c0_3 = arith.constant 0 : index
    %c0_4 = arith.constant 0 : index
    %3 = vector.load %arg3[%c0_3, %c0_4] : memref<16x1xf32, #tpu.memory_space<vmem>>, vector<16x1xf32>
    %4 = vector.broadcast %3 : vector<16x1xf32> to vector<16x4xf32>
    %5 = arith.mulf %2, %4 : vector<16x4xf32>
    %c0_5 = arith.constant 0 : index
    %c0_6 = arith.constant 0 : index
    %6 = vector.load %arg4[%c0_5, %c0_6] : memref<16x1xf32, #tpu.memory_space<vmem>>, vector<16x1xf32>
    %7 = vector.broadcast %6 : vector<16x1xf32> to vector<16x4xf32>
    %8 = arith.addf %5, %7 : vector<16x4xf32>
    %cst_7 = arith.constant 0.000000e+00 : f32
    %9 = vector.broadcast %cst_7 : f32 to vector<16x4xf32>
    %10 = arith.maximumf %8, %9 : vector<16x4xf32>
    %11 = arith.truncf %10 : vector<16x4xf32> to vector<16x4xbf16>
    %c0_8 = arith.constant 0 : index
    %c0_9 = arith.constant 0 : index
    %12 = vector.load %arg5[%c0_8, %c0_9] : memref<16x4xbf16, #tpu.memory_space<vmem>>, vector<16x4xbf16>
    tpu.vector_store %arg5[%c0_8, %c0_9], %11 {strides = array<i32>} : memref<16x4xbf16, #tpu.memory_space<vmem>>, vector<16x4xbf16>,
    return
  }
  func.func @transform_0(%arg0: i32) -> (i32, i32) {
    %c0_i32 = arith.constant 0 : i32
    %c0_i32_0 = arith.constant 0 : i32
    %c0_i32_1 = arith.constant 0 : i32
    return %c0_i32, %c0_i32_0 : i32, i32
  }
  func.func @transform_1(%arg0: i32) -> (i32, i32) {
    %c0_i32 = arith.constant 0 : i32
    %c0_i32_0 = arith.constant 0 : i32
    return %c0_i32, %arg0 : i32, i32
  }
  func.func @transform_2(%arg0: i32) -> (i32, i32) {
    %c0_i32 = arith.constant 0 : i32
    %c0_i32_0 = arith.constant 0 : i32
    %c0_i32_1 = arith.constant 0 : i32
    return %c0_i32, %c0_i32_0 : i32, i32
  }
  func.func @transform_3(%arg0: i32) -> (i32, i32) {
    %c0_i32 = arith.constant 0 : i32
    %c0_i32_0 = arith.constant 0 : i32
    %c0_i32_1 = arith.constant 0 : i32
    return %c0_i32, %c0_i32_0 : i32, i32
  }
  func.func @transform_4(%arg0: i32) -> (i32, i32) {
    %c0_i32 = arith.constant 0 : i32
    %c0_i32_0 = arith.constant 0 : i32
    return %c0_i32, %arg0 : i32, i32
  }
}

module attributes {stable_mosaic.version = 11 : i64} {
  func.func @_conv_bn_relu_kernel(%arg0: i32, %arg1: memref<16x144xbf16, #tpu.memory_space<vmem>>, %arg2: memref<144x128xbf16, #tpu.memory_space<vmem>>, %arg3: memref<16x1xf32, #tpu.memory_space<vmem>>, %arg4: memref<16x1xf32, #tpu.memory_space<vmem>>, %arg5: memref<16x128xbf16, #tpu.memory_space<vmem>>) attributes {dimension_semantics = [#tpu.dimension_semantics<parallel>], iteration_bounds = array<i64: 2>, scalar_prefetch = 0 : i64, scratch_operands = 0 : i64, tpu.core_type = #tpu.core_type<tc>, window_params = [{pipeline_mode = #tpu.pipeline_mode<synchronous>, transform_indices = @transform_0, window_bounds = array<i64: 16, 144>}, {transform_indices = @transform_1, window_bounds = array<i64: 144, 128>}, {pipeline_mode = #tpu.pipeline_mode<synchronous>, transform_indices = @transform_2, window_bounds = array<i64: 16, 1>}, {pipeline_mode = #tpu.pipeline_mode<synchronous>, transform_indices = @transform_3, window_bounds = array<i64: 16, 1>}, {transform_indices = @transform_4, window_bounds = array<i64: 16, 128>}]} {
    %c0 = arith.constant 0 : index
    %c0_0 = arith.constant 0 : index
    %0 = vector.load %arg1[%c0, %c0_0] : memref<16x144xbf16, #tpu.memory_space<vmem>>, vector<16x144xbf16>
    %c0_1 = arith.constant 0 : index
    %c0_2 = arith.constant 0 : index
    %1 = vector.load %arg2[%c0_1, %c0_2] : memref<144x128xbf16, #tpu.memory_space<vmem>>, vector<144x128xbf16>
    %cst = arith.constant dense<0.000000e+00> : vector<16x128xf32>
    %2 = tpu.matmul %0, %1, %cst {dimension_numbers = #tpu.dot_dimension_numbers<[1], [0], [0], [1], [0, 0, 1, 1], [], []>} : vector<16x144xbf16>, vector<144x128xbf16>, vector<16x128xf32> -> vector<16x128xf32>
    %c0_3 = arith.constant 0 : index
    %c0_4 = arith.constant 0 : index
    %3 = vector.load %arg3[%c0_3, %c0_4] : memref<16x1xf32, #tpu.memory_space<vmem>>, vector<16x1xf32>
    %4 = vector.broadcast %3 : vector<16x1xf32> to vector<16x128xf32>
    %5 = arith.mulf %2, %4 : vector<16x128xf32>
    %c0_5 = arith.constant 0 : index
    %c0_6 = arith.constant 0 : index
    %6 = vector.load %arg4[%c0_5, %c0_6] : memref<16x1xf32, #tpu.memory_space<vmem>>, vector<16x1xf32>
    %7 = vector.broadcast %6 : vector<16x1xf32> to vector<16x128xf32>
    %8 = arith.addf %5, %7 : vector<16x128xf32>
    %cst_7 = arith.constant 0.000000e+00 : f32
    %9 = vector.broadcast %cst_7 : f32 to vector<16x128xf32>
    %10 = arith.maximumf %8, %9 : vector<16x128xf32>
    %11 = arith.truncf %10 : vector<16x128xf32> to vector<16x128xbf16>
    %c0_8 = arith.constant 0 : index
    %c0_9 = arith.constant 0 : index
    %12 = vector.load %arg5[%c0_8, %c0_9] : memref<16x128xbf16, #tpu.memory_space<vmem>>, vector<16x128xbf16>
    tpu.vector_store %arg5[%c0_8, %c0_9], %11 {strides = array<i32>} : memref<16x128xbf16, #tpu.memory_space<vmem>>, vector<16x128xbf16>,
    return
  }
  func.func @transform_0(%arg0: i32) -> (i32, i32) {
    %c0_i32 = arith.constant 0 : i32
    %c0_i32_0 = arith.constant 0 : i32
    %c0_i32_1 = arith.constant 0 : i32
    return %c0_i32, %c0_i32_0 : i32, i32
  }
  func.func @transform_1(%arg0: i32) -> (i32, i32) {
    %c0_i32 = arith.constant 0 : i32
    %c0_i32_0 = arith.constant 0 : i32
    return %c0_i32, %arg0 : i32, i32
  }
  func.func @transform_2(%arg0: i32) -> (i32, i32) {
    %c0_i32 = arith.constant 0 : i32
    %c0_i32_0 = arith.constant 0 : i32
    %c0_i32_1 = arith.constant 0 : i32
    return %c0_i32, %c0_i32_0 : i32, i32
  }
  func.func @transform_3(%arg0: i32) -> (i32, i32) {
    %c0_i32 = arith.constant 0 : i32
    %c0_i32_0 = arith.constant 0 : i32
    %c0_i32_1 = arith.constant 0 : i32
    return %c0_i32, %c0_i32_0 : i32, i32
  }
  func.func @transform_4(%arg0: i32) -> (i32, i32) {
    %c0_i32 = arith.constant 0 : i32
    %c0_i32_0 = arith.constant 0 : i32
    return %c0_i32, %arg0 : i32, i32
  }
}

module attributes {stable_mosaic.version = 11 : i64} {
  func.func @_conv_bn_relu_kernel(%arg0: i32, %arg1: memref<32x144xbf16, #tpu.memory_space<vmem>>, %arg2: memref<144x256xbf16, #tpu.memory_space<vmem>>, %arg3: memref<32x1xf32, #tpu.memory_space<vmem>>, %arg4: memref<32x1xf32, #tpu.memory_space<vmem>>, %arg5: memref<32x256xbf16, #tpu.memory_space<vmem>>) attributes {dimension_semantics = [#tpu.dimension_semantics<parallel>], iteration_bounds = array<i64: 2>, scalar_prefetch = 0 : i64, scratch_operands = 0 : i64, tpu.core_type = #tpu.core_type<tc>, window_params = [{pipeline_mode = #tpu.pipeline_mode<synchronous>, transform_indices = @transform_0, window_bounds = array<i64: 32, 144>}, {transform_indices = @transform_1, window_bounds = array<i64: 144, 256>}, {pipeline_mode = #tpu.pipeline_mode<synchronous>, transform_indices = @transform_2, window_bounds = array<i64: 32, 1>}, {pipeline_mode = #tpu.pipeline_mode<synchronous>, transform_indices = @transform_3, window_bounds = array<i64: 32, 1>}, {transform_indices = @transform_4, window_bounds = array<i64: 32, 256>}]} {
    %c0 = arith.constant 0 : index
    %c0_0 = arith.constant 0 : index
    %0 = vector.load %arg1[%c0, %c0_0] : memref<32x144xbf16, #tpu.memory_space<vmem>>, vector<32x144xbf16>
    %c0_1 = arith.constant 0 : index
    %c0_2 = arith.constant 0 : index
    %1 = vector.load %arg2[%c0_1, %c0_2] : memref<144x256xbf16, #tpu.memory_space<vmem>>, vector<144x256xbf16>
    %cst = arith.constant dense<0.000000e+00> : vector<32x256xf32>
    %2 = tpu.matmul %0, %1, %cst {dimension_numbers = #tpu.dot_dimension_numbers<[1], [0], [0], [1], [0, 0, 1, 1], [], []>} : vector<32x144xbf16>, vector<144x256xbf16>, vector<32x256xf32> -> vector<32x256xf32>
    %c0_3 = arith.constant 0 : index
    %c0_4 = arith.constant 0 : index
    %3 = vector.load %arg3[%c0_3, %c0_4] : memref<32x1xf32, #tpu.memory_space<vmem>>, vector<32x1xf32>
    %4 = vector.broadcast %3 : vector<32x1xf32> to vector<32x256xf32>
    %5 = arith.mulf %2, %4 : vector<32x256xf32>
    %c0_5 = arith.constant 0 : index
    %c0_6 = arith.constant 0 : index
    %6 = vector.load %arg4[%c0_5, %c0_6] : memref<32x1xf32, #tpu.memory_space<vmem>>, vector<32x1xf32>
    %7 = vector.broadcast %6 : vector<32x1xf32> to vector<32x256xf32>
    %8 = arith.addf %5, %7 : vector<32x256xf32>
    %cst_7 = arith.constant 0.000000e+00 : f32
    %9 = vector.broadcast %cst_7 : f32 to vector<32x256xf32>
    %10 = arith.maximumf %8, %9 : vector<32x256xf32>
    %11 = arith.truncf %10 : vector<32x256xf32> to vector<32x256xbf16>
    %c0_8 = arith.constant 0 : index
    %c0_9 = arith.constant 0 : index
    %12 = vector.load %arg5[%c0_8, %c0_9] : memref<32x256xbf16, #tpu.memory_space<vmem>>, vector<32x256xbf16>
    tpu.vector_store %arg5[%c0_8, %c0_9], %11 {strides = array<i32>} : memref<32x256xbf16, #tpu.memory_space<vmem>>, vector<32x256xbf16>,
    return
  }
  func.func @transform_0(%arg0: i32) -> (i32, i32) {
    %c0_i32 = arith.constant 0 : i32
    %c0_i32_0 = arith.constant 0 : i32
    %c0_i32_1 = arith.constant 0 : i32
    return %c0_i32, %c0_i32_0 : i32, i32
  }
  func.func @transform_1(%arg0: i32) -> (i32, i32) {
    %c0_i32 = arith.constant 0 : i32
    %c0_i32_0 = arith.constant 0 : i32
    return %c0_i32, %arg0 : i32, i32
  }
  func.func @transform_2(%arg0: i32) -> (i32, i32) {
    %c0_i32 = arith.constant 0 : i32
    %c0_i32_0 = arith.constant 0 : i32
    %c0_i32_1 = arith.constant 0 : i32
    return %c0_i32, %c0_i32_0 : i32, i32
  }
  func.func @transform_3(%arg0: i32) -> (i32, i32) {
    %c0_i32 = arith.constant 0 : i32
    %c0_i32_0 = arith.constant 0 : i32
    %c0_i32_1 = arith.constant 0 : i32
    return %c0_i32, %c0_i32_0 : i32, i32
  }
  func.func @transform_4(%arg0: i32) -> (i32, i32) {
    %c0_i32 = arith.constant 0 : i32
    %c0_i32_0 = arith.constant 0 : i32
    return %c0_i32, %arg0 : i32, i32
  }
}

module attributes {stable_mosaic.version = 11 : i64} {
  func.func @_attention_kernel(%arg0: i32, %arg1: memref<8x32xbf16, #tpu.memory_space<vmem>>, %arg2: memref<1x32x256xbf16, #tpu.memory_space<vmem>>, %arg3: memref<1x256x32xbf16, #tpu.memory_space<vmem>>, %arg4: memref<1x8x32xf32, #tpu.memory_space<vmem>>, %arg5: memref<1x8x256xf32, #tpu.memory_space<vmem>>) attributes {dimension_semantics = [#tpu.dimension_semantics<parallel>], iteration_bounds = array<i64: 2>, scalar_prefetch = 0 : i64, scratch_operands = 0 : i64, tpu.core_type = #tpu.core_type<tc>, window_params = [{pipeline_mode = #tpu.pipeline_mode<synchronous>, transform_indices = @transform_0, window_bounds = array<i64: 8, 32>}, {transform_indices = @transform_1, window_bounds = array<i64: 1, 32, 256>}, {transform_indices = @transform_2, window_bounds = array<i64: 1, 256, 32>}, {transform_indices = @transform_3, window_bounds = array<i64: 1, 8, 32>}, {transform_indices = @transform_4, window_bounds = array<i64: 1, 8, 256>}]} {
    %c0 = arith.constant 0 : index
    %c0_0 = arith.constant 0 : index
    %0 = vector.load %arg1[%c0, %c0_0] : memref<8x32xbf16, #tpu.memory_space<vmem>>, vector<8x32xbf16>
    %c0_1 = arith.constant 0 : index
    %c0_2 = arith.constant 0 : index
    %c0_3 = arith.constant 0 : index
    %1 = vector.load %arg2[%c0_1, %c0_2, %c0_3] : memref<1x32x256xbf16, #tpu.memory_space<vmem>>, vector<1x32x256xbf16>
    %2 = vector.shape_cast %1 : vector<1x32x256xbf16> to vector<32x256xbf16>
    %cst = arith.constant dense<0.000000e+00> : vector<8x256xf32>
    %3 = tpu.matmul %0, %2, %cst {dimension_numbers = #tpu.dot_dimension_numbers<[1], [0], [0], [1], [0, 0, 1, 1], [], []>} : vector<8x32xbf16>, vector<32x256xbf16>, vector<8x256xf32> -> vector<8x256xf32>
    %cst_4 = arith.constant dense<0xFF800000> : vector<8xf32>
    %4 = vector.multi_reduction <maximumf>, %3, %cst_4 [1] : vector<8x256xf32> to vector<8xf32>
    %5 = vector.shape_cast %4 : vector<8xf32> to vector<8x1xf32>
    %6 = vector.broadcast %5 : vector<8x1xf32> to vector<8x256xf32>
    %7 = arith.subf %3, %6 : vector<8x256xf32>
    %8 = math.exp %7 : vector<8x256xf32>
    %cst_5 = arith.constant dense<0.000000e+00> : vector<8xf32>
    %9 = vector.multi_reduction <add>, %8, %cst_5 [1] : vector<8x256xf32> to vector<8xf32>
    %10 = vector.shape_cast %9 : vector<8xf32> to vector<8x1xf32>
    %11 = tpu.reciprocal %10 {approx = true} : vector<8x1xf32> -> vector<8x1xf32>
    %12 = vector.broadcast %11 : vector<8x1xf32> to vector<8x256xf32>
    %13 = arith.mulf %8, %12 : vector<8x256xf32>
    %14 = arith.truncf %13 : vector<8x256xf32> to vector<8x256xbf16>
    %c0_6 = arith.constant 0 : index
    %c0_7 = arith.constant 0 : index
    %c0_8 = arith.constant 0 : index
    %15 = vector.load %arg3[%c0_6, %c0_7, %c0_8] : memref<1x256x32xbf16, #tpu.memory_space<vmem>>, vector<1x256x32xbf16>
    %16 = vector.shape_cast %15 : vector<1x256x32xbf16> to vector<256x32xbf16>
    %cst_9 = arith.constant dense<0.000000e+00> : vector<8x32xf32>
    %17 = tpu.matmul %14, %16, %cst_9 {dimension_numbers = #tpu.dot_dimension_numbers<[1], [0], [0], [1], [0, 0, 1, 1], [], []>} : vector<8x256xbf16>, vector<256x32xbf16>, vector<8x32xf32> -> vector<8x32xf32>
    %c0_10 = arith.constant 0 : index
    %c0_11 = arith.constant 0 : index
    %c0_12 = arith.constant 0 : index
    %18 = vector.load %arg4[%c0_10, %c0_11, %c0_12] : memref<1x8x32xf32, #tpu.memory_space<vmem>>, vector<1x8x32xf32>
    %19 = vector.shape_cast %18 : vector<1x8x32xf32> to vector<8x32xf32>
    %20 = vector.shape_cast %17 : vector<8x32xf32> to vector<1x8x32xf32>
    tpu.vector_store %arg4[%c0_10, %c0_11, %c0_12], %20 {strides = array<i32>} : memref<1x8x32xf32, #tpu.memory_space<vmem>>, vector<1x8x32xf32>,
    %c0_13 = arith.constant 0 : index
    %c0_14 = arith.constant 0 : index
    %c0_15 = arith.constant 0 : index
    %21 = vector.load %arg5[%c0_13, %c0_14, %c0_15] : memref<1x8x256xf32, #tpu.memory_space<vmem>>, vector<1x8x256xf32>
    %22 = vector.shape_cast %21 : vector<1x8x256xf32> to vector<8x256xf32>
    %23 = vector.shape_cast %13 : vector<8x256xf32> to vector<1x8x256xf32>
    tpu.vector_store %arg5[%c0_13, %c0_14, %c0_15], %23 {strides = array<i32>} : memref<1x8x256xf32, #tpu.memory_space<vmem>>, vector<1x8x256xf32>,
    return
  }
  func.func @transform_0(%arg0: i32) -> (i32, i32) {
    %c0_i32 = arith.constant 0 : i32
    %c0_i32_0 = arith.constant 0 : i32
    %c0_i32_1 = arith.constant 0 : i32
    return %c0_i32, %c0_i32_0 : i32, i32
  }
  func.func @transform_1(%arg0: i32) -> (i32, i32, i32) {
    %c0_i32 = arith.constant 0 : i32
    %c0_i32_0 = arith.constant 0 : i32
    %c0_i32_1 = arith.constant 0 : i32
    return %arg0, %c0_i32, %c0_i32_0 : i32, i32, i32
  }
  func.func @transform_2(%arg0: i32) -> (i32, i32, i32) {
    %c0_i32 = arith.constant 0 : i32
    %c0_i32_0 = arith.constant 0 : i32
    %c0_i32_1 = arith.constant 0 : i32
    return %arg0, %c0_i32, %c0_i32_0 : i32, i32, i32
  }
  func.func @transform_3(%arg0: i32) -> (i32, i32, i32) {
    %c0_i32 = arith.constant 0 : i32
    %c0_i32_0 = arith.constant 0 : i32
    %c0_i32_1 = arith.constant 0 : i32
    return %arg0, %c0_i32, %c0_i32_0 : i32, i32, i32
  }
  func.func @transform_4(%arg0: i32) -> (i32, i32, i32) {
    %c0_i32 = arith.constant 0 : i32
    %c0_i32_0 = arith.constant 0 : i32
    %c0_i32_1 = arith.constant 0 : i32
    return %arg0, %c0_i32, %c0_i32_0 : i32, i32, i32
  }
}

</mosaic_0001>

<bundles_post_ra>
// kernel: position_attention_forward.9
= control target key start
LH: loop header
LB: loop body
LE: loop exit
PB: predicated region body
PF: predicated region fallthrough
CT: control target
= control target key end

     0   :  { %s951_s15 = smov 0   ;;  %s953_s16 = smov 0   ;;  %s1132_s0 = inlined_call_operand.vmem [shape: bf16[16,288], index: 0, kind: input, shape index: {}]   ;;  %s1133_s1 = inlined_call_operand.vmem [shape: bf16[288,256], index: 1, kind: input, shape index: {}]   ;;  %s1134_s2 = inlined_call_operand.vmem [shape: f32[16,1], index: 2, kind: input, shape index: {}]   ;;  %s1135_s3 = inlined_call_operand.vmem [shape: f32[16,1], index: 3, kind: input, shape index: {}]   ;;  %s1136_s4 = inlined_call_operand.vmem [shape: bf16[16,256], index: 4, kind: output, shape index: {}]  }
   0x1   :  { %s955_s17 = smov 0  }
   0x2 LB: > { %s771_s18 = sadd.s32 4294967295, %s921_s17   ;;  %s968_s19 = sadd.s32 1, %s921_s17   ;;  %s921_s17 = sphi %s955_s17, %s1140_s17   ;;  %s917_s16 = sphi %s953_s16, %s1139_s16   ;;  %s913_s15 = sphi %s951_s15, %s1138_s15  }
   0x3   : > { %s39_s20 = ssub.s32 %s921_s17, %s968_s19  ;;  %s42_s21 = sadd.s32 1, %s917_s16 }
   0x4   : > { %p40_p0 = scmp.eq.s32.totalorder %s39_s20, 0  ;;  %p49_p1 = scmp.ne.s32.totalorder %s917_s16, %s913_s15 }
   0x5   : > { %p50_p2 = scmp.eq.s32.totalorder %s921_s17, 0  ;;  %p121_p3 = scmp.eq.s32.totalorder %s771_s18, 1 }
   0x6   : > { %s979_s22 = scalar_select %p40_p0, %s917_s16, %s42_s21  }
   0x7   : > { %p51_p4 = por %p50_p2, %p49_p1  ;;  %p981_p5 = por %p121_p3, %p49_p1 }
   0x8   : > { %p774_p6 = scmp.ge.s32.totalorder %s921_s17, 2 }
   0xa   : > { %152 = sbr.rel (%p774_p6) target bundleno = 45 (0x2d), region = 28 }
  0x11   : > { %155 = sbr.rel (!%p51_p4) target bundleno = 45 (0x2d), region = 32  ;;  %s157_s24 = sand.u32 (%p51_p4), 1, %s917_s16  }
  0x12   : > { %s775_s25 = sshll.u32 (%p51_p4), %s921_s17, 2  ;;  %s846_s26 = smul.u32 (%p51_p4), 144, %s157_s24 }
  0x13   : > { %s991_s29 = scalar_lea.vmem (%p51_p4), %s1133_s1, %s775_s25 }
  0x14   : > { %v177_v0 = vld [vmem:[%s991_s29] sm:$0xf] (%p51_p4)  ;;  %v179_v1 = vld [vmem:[%s991_s29 + $0x8] sm:$0xf] (%p51_p4)  ;;  %v181_v2 = vld [vmem:[%s991_s29 + $0x10] sm:$0xf] (%p51_p4) }
  0x15   : > { %v183_v3 = vld [vmem:[%s991_s29 + $0x18] sm:$0xf] (%p51_p4)  ;;  %v185_v4 = vld [vmem:[%s991_s29 + $0x20] sm:$0xf] (%p51_p4)  ;;  %s998_s30 = scalar_lea.vmem (%p51_p4), [#allocation2], %s846_s26 }
  0x16   : > { %178 = vst [vmem:[%s998_s30] sm:$0xf] (%p51_p4), %v177_v0  ;;  %180 = vst [vmem:[%s998_s30 + $0x4] sm:$0xf] (%p51_p4), %v179_v1  ;;  %v187_v5 = vld [vmem:[%s991_s29 + $0x28] sm:$0xf] (%p51_p4) }
  0x17   : > { %182 = vst [vmem:[%s998_s30 + $0x8] sm:$0xf] (%p51_p4), %v181_v2  ;;  %184 = vst [vmem:[%s998_s30 + $0xc] sm:$0xf] (%p51_p4), %v183_v3  ;;  %v189_v6 = vld [vmem:[%s991_s29 + $0x30] sm:$0xf] (%p51_p4) }
  0x18   : > { %186 = vst [vmem:[%s998_s30 + $0x10] sm:$0xf] %v185_v4  ;;  %v191_v7 = vld [vmem:[%s991_s29 + $0x38] sm:$0xf]  ;;  %188 = vst [vmem:[%s998_s30 + $0x14] sm:$0xf] %v187_v5 }
  0x19   : > { %190 = vst [vmem:[%s998_s30 + $0x18] sm:$0xf] %v189_v6  ;;  %192 = vst [vmem:[%s998_s30 + $0x1c] sm:$0xf] %v191_v7  ;;  %v193_v8 = vld [vmem:[%s991_s29 + $0x40] sm:$0xf] }
  0x1a   : > { %v195_v9 = vld [vmem:[%s991_s29 + $0x48] sm:$0xf]  ;;  %v197_v10 = vld [vmem:[%s991_s29 + $0x50] sm:$0xf]  ;;  %194 = vst [vmem:[%s998_s30 + $0x20] sm:$0xf] %v193_v8 }
  0x1b   : > { %196 = vst [vmem:[%s998_s30 + $0x24] sm:$0xf] %v195_v9  ;;  %198 = vst [vmem:[%s998_s30 + $0x28] sm:$0xf] %v197_v10  ;;  %v199_v11 = vld [vmem:[%s991_s29 + $0x58] sm:$0xf] }
  0x1c   : > { %v201_v12 = vld [vmem:[%s991_s29 + $0x60] sm:$0xf]  ;;  %v203_v13 = vld [vmem:[%s991_s29 + $0x68] sm:$0xf]  ;;  %200 = vst [vmem:[%s998_s30 + $0x2c] sm:$0xf] %v199_v11 }
  0x1d   : > { %202 = vst [vmem:[%s998_s30 + $0x30] sm:$0xf] %v201_v12  ;;  %204 = vst [vmem:[%s998_s30 + $0x34] sm:$0xf] %v203_v13  ;;  %v205_v14 = vld [vmem:[%s991_s29 + $0x70] sm:$0xf] }
  0x1e   : > { %v207_v15 = vld [vmem:[%s991_s29 + $0x78] sm:$0xf]  ;;  %v209_v16 = vld [vmem:[%s991_s29 + $0x80] sm:$0xf]  ;;  %206 = vst [vmem:[%s998_s30 + $0x38] sm:$0xf] %v205_v14 }
  0x1f   : > { %208 = vst [vmem:[%s998_s30 + $0x3c] sm:$0xf] %v207_v15  ;;  %210 = vst [vmem:[%s998_s30 + $0x40] sm:$0xf] %v209_v16  ;;  %v211_v17 = vld [vmem:[%s991_s29 + $0x88] sm:$0xf] }
  0x20   : > { %v213_v18 = vld [vmem:[%s991_s29 + $0x90] sm:$0xf]  ;;  %v215_v19 = vld [vmem:[%s991_s29 + $0x98] sm:$0xf]  ;;  %212 = vst [vmem:[%s998_s30 + $0x44] sm:$0xf] %v211_v17 }
  0x21   : > { %214 = vst [vmem:[%s998_s30 + $0x48] sm:$0xf] %v213_v18  ;;  %216 = vst [vmem:[%s998_s30 + $0x4c] sm:$0xf] %v215_v19  ;;  %v217_v20 = vld [vmem:[%s991_s29 + $0xa0] sm:$0xf] }
  0x22   : > { %v219_v21 = vld [vmem:[%s991_s29 + $0xa8] sm:$0xf]  ;;  %v221_v22 = vld [vmem:[%s991_s29 + $0xb0] sm:$0xf]  ;;  %218 = vst [vmem:[%s998_s30 + $0x50] sm:$0xf] %v217_v20 }
  0x23   : > { %220 = vst [vmem:[%s998_s30 + $0x54] sm:$0xf] %v219_v21  ;;  %222 = vst [vmem:[%s998_s30 + $0x58] sm:$0xf] %v221_v22  ;;  %v223_v23 = vld [vmem:[%s991_s29 + $0xb8] sm:$0xf] }
  0x24   : > { %v225_v24 = vld [vmem:[%s991_s29 + $0xc0] sm:$0xf]  ;;  %v227_v25 = vld [vmem:[%s991_s29 + $0xc8] sm:$0xf]  ;;  %224 = vst [vmem:[%s998_s30 + $0x5c] sm:$0xf] %v223_v23 }
  0x25   : > { %226 = vst [vmem:[%s998_s30 + $0x60] sm:$0xf] %v225_v24  ;;  %228 = vst [vmem:[%s998_s30 + $0x64] sm:$0xf] %v227_v25  ;;  %v229_v26 = vld [vmem:[%s991_s29 + $0xd0] sm:$0xf] }
  0x26   : > { %v231_v27 = vld [vmem:[%s991_s29 + $0xd8] sm:$0xf]  ;;  %v233_v28 = vld [vmem:[%s991_s29 + $0xe0] sm:$0xf]  ;;  %230 = vst [vmem:[%s998_s30 + $0x68] sm:$0xf] %v229_v26 }
  0x27   : > { %232 = vst [vmem:[%s998_s30 + $0x6c] sm:$0xf] %v231_v27  ;;  %234 = vst [vmem:[%s998_s30 + $0x70] sm:$0xf] %v233_v28  ;;  %v235_v29 = vld [vmem:[%s991_s29 + $0xe8] sm:$0xf] }
  0x28   : > { %v237_v30 = vld [vmem:[%s991_s29 + $0xf0] sm:$0xf]  ;;  %v239_v31 = vld [vmem:[%s991_s29 + $0xf8] sm:$0xf]  ;;  %236 = vst [vmem:[%s998_s30 + $0x74] sm:$0xf] %v235_v29 }
  0x29   : > { %238 = vst [vmem:[%s998_s30 + $0x78] sm:$0xf] %v237_v30  ;;  %240 = vst [vmem:[%s998_s30 + $0x7c] sm:$0xf] %v239_v31  ;;  %v241_v32 = vld [vmem:[%s991_s29 + $0x100] sm:$0xf] }
  0x2a   : > { %v243_v33 = vld [vmem:[%s991_s29 + $0x108] sm:$0xf]  ;;  %v245_v34 = vld [vmem:[%s991_s29 + $0x110] sm:$0xf]  ;;  %242 = vst [vmem:[%s998_s30 + $0x80] sm:$0xf] %v241_v32 }
  0x2b   : > { %244 = vst [vmem:[%s998_s30 + $0x84] sm:$0xf] %v243_v33  ;;  %246 = vst [vmem:[%s998_s30 + $0x88] sm:$0xf] %v245_v34  ;;  %v247_v35 = vld [vmem:[%s991_s29 + $0x118] sm:$0xf] }
  0x2c   : > { %248 = vst [vmem:[%s998_s30 + $0x8c] sm:$0xf] %v247_v35 }
  0x2d PF: > { %p776_p7 = scmp.ge.s32.totalorder %s921_s17, 1  ;;  %p342_p8 = scmp.lt.s32.totalorder %s921_s17, 3 }
  0x2f   : > { %p343_p9 = pnand %p776_p7, %p342_p8 }
  0x30   : > { %s349_s5 = sand.u32 (!%p343_p9), 1, %s913_s15   ;;  %v923_v36 = vmov (!%p343_p9), 0.0   ;;  %v897_v37 = vld [vmem:[%s1132_s0 + $0x4] ss:$12 sps:$4 sm:$0xff] (!%p343_p9)   ;;  %vm924_vm0 = vmmov (!%p343_p9), 0   ;;  %v925_v38 = vmov (!%p343_p9), 0  }
  0x31   : > { %346 = sbr.rel (%p343_p9) target bundleno = 322 (0x142), region = 73  ;;  %838 = vmatprep.subr.bf16.mxu1 (!%p343_p9), %v923_v36  ;;  %842 = vmatprep.mubr.msk.bf16.mxu1 (!%p343_p9), %vm924_vm0, %v923_v36  ;;  %v623_v39 = vld [vmem:[%s1134_s2] sm:$0xff] (!%p343_p9)  ;;  %v624_v41 = vld [vmem:[%s1134_s2 + $0x8] sm:$0xff] (!%p343_p9)  ;;  %vm537_vm1 = vcmask (!%p343_p9), 261120   ;;  %s777_s29 = sshll.u32 (!%p343_p9), %s349_s5, 3 }
  0x32   : > { %s847_s6 = smul.u32 (!%p343_p9), 144, %s349_s5  ;;  %573 = vmatprep.mubr.bf16.mxu0 (!%p343_p9), %v897_v37  ;;  %875 = vset.pattern.permute.xlu0 (!%p343_p9), %v925_v38  ;;  %v637_v40 = vld [vmem:[%s1135_s3] sm:$0xff] (!%p343_p9)  ;;  %v638_v55 = vld [vmem:[%s1135_s3 + $0x8] sm:$0xff] (!%p343_p9)  ;;  %s372_s30 = scalar_lea.vmem (!%p343_p9), [#allocation3], %s777_s29 }
  0x33   : > { %627 = vperm.xlu0 (!%p343_p9), %875, %v623_v39   ;;  %876 = vset.pattern.permute.xlu1 (!%p343_p9), %v925_v38  ;;  %v898_v57 = vld [vmem:[%s1132_s0 + $0x8] ss:$12 sps:$4 sm:$0xff] (!%p343_p9)   ;;  %v895_v62 = vld [vmem:[%s1132_s0] ss:$12 sps:$4 sm:$0xff] (!%p343_p9)  }
  0x34   : > { %s1084_s20 = scalar_lea.vmem (!%p343_p9), [#allocation2], %s847_s6  ;;  %641 = vperm.xlu1 (!%p343_p9), %876, %v637_v40  }
  0x35   : > { %v877_v42 = vld [vmem:[%s1084_s20 + $0x40] sm:$0xff] (!%p343_p9)   ;;  %v879_v44 = vld [vmem:[%s1084_s20 + $0x48] sm:$0xff] (!%p343_p9)   ;;  %v881_v46 = vld [vmem:[%s1084_s20 + $0x50] sm:$0xff] (!%p343_p9)  }
  0x36   : > { %v878_v43 = vld [vmem:[%s1084_s20] sm:$0xff] (!%p343_p9)   ;;  %813 = vmatprep.subr.bf16.mxu0 (!%p343_p9), %v877_v42  ;;  %v880_v45 = vld [vmem:[%s1084_s20 + $0x8] sm:$0xff] (!%p343_p9)   ;;  %v882_v47 = vld [vmem:[%s1084_s20 + $0x10] sm:$0xff] (!%p343_p9)  }
  0x37   : > { %814 = vmatpush3.bf16.msra.mxu0 (!%p343_p9), %v878_v43  ;;  %632 = vperm.xlu0 (!%p343_p9), %875, %v624_v41   ;;  %v883_v48 = vld [vmem:[%s1084_s20 + $0x58] sm:$0xff] (!%p343_p9)   ;;  %v885_v50 = vld [vmem:[%s1084_s20 + $0x60] sm:$0xff] (!%p343_p9)   ;;  %v887_v53 = vld [vmem:[%s1084_s20 + $0x68] sm:$0xff] (!%p343_p9)  }
  0x38   : > { %815 = vmatprep.subr.bf16.mxu0 %v879_v44  ;;  %v884_v49 = vld [vmem:[%s1084_s20 + $0x18] sm:$0xff]   ;;  %v891_v51 = vld [vmem:[%s1084_s20 + $0x80] sm:$0xff]   ;;  %v894_v54 = vld [vmem:[%s1084_s20 + $0x88] sm:$0xff]   ;;  %646 = vperm.xlu1 %876, %v638_v55   ;;  %s803_s6 = sshll.u32 (%p981_p5), %s771_s18, 2 }
  0x39   : > { %v886_v52 = vld [vmem:[%s1084_s20 + $0x20] sm:$0xff]   ;;  %839 = vmatpush3.bf16.msra.mxu1 %v891_v51  ;;  %v888_v56 = vld [vmem:[%s1084_s20 + $0x28] sm:$0xff]   ;;  %v889_v58 = vld [vmem:[%s1084_s20 + $0x70] sm:$0xff]   ;;  %s671_s9 = scalar_lea.vmem (%p981_p5), %s1136_s4, %s803_s6 }
  0x3a   : > { %840 = vmatprep.subr.bf16.mxu1 %v923_v36  ;;  %v890_v59 = vld [vmem:[%s1084_s20 + $0x30] sm:$0xff]   ;;  %v892_v60 = vld [vmem:[%s1084_s20 + $0x78] sm:$0xff]  }
  0x3b   : > { %816 = vmatpush3.bf16.msra.mxu0 %v880_v45  ;;  %v893_v61 = vld [vmem:[%s1084_s20 + $0x38] sm:$0xff]  }
  0x3c   : > { %817 = vmatprep.subr.bf16.mxu0 %v881_v46 }
  0x3d   : > { %841 = vmatpush3.bf16.msra.mxu1 %v894_v54 }
  0x3f   : > { %818 = vmatpush3.bf16.msra.mxu0 %v882_v47 }
  0x40   : > { %819 = vmatprep.subr.bf16.mxu0 %v883_v48  ;;  %843 = vmatmul.mubr.msk.bf16.vlgmr.msra.gmra.mrb[0].mxu1 %vm537_vm1, %v898_v57 }
  0x43   : > { %820 = vmatpush3.bf16.msra.mxu0 %v884_v49 }
  0x44   : > { %821 = vmatprep.subr.bf16.mxu0 %v885_v50 }
  0x47   : > { %822 = vmatpush3.bf16.msra.mxu0 %v886_v52 }
  0x48   : > { %823 = vmatprep.subr.bf16.mxu0 %v887_v53 }
  0x4b   : > { %824 = vmatpush3.bf16.msra.mxu0 %v888_v56 }
  0x4c   : > { %825 = vmatprep.subr.bf16.mxu0 %v889_v58 }
  0x4f   : > { %826 = vmatpush3.bf16.msra.mxu0 %v890_v59 }
  0x50   : > { %827 = vmatprep.subr.bf16.mxu0 %v892_v60 }
  0x53   : > { %828 = vmatpush3.bf16.msra.mxu0 %v893_v61 }
  0x56   : > { %574 = vmatmul.mubr.bf16.vlgmr.msra.gmra.mrb[0].mxu0 %v895_v62 }
  0xb2   : > { %v628_v4 = vpop.permute.xlu0 %627 }
  0xb3   : > { %v642_v8 = vpop.permute.xlu1 %641 }
  0xb6   : > { %v633_v14 = vpop.permute.xlu0 %632 }
  0xb7   : > { %v647_v17 = vpop.permute.xlu1 %646 }
 0x113   : > { %v616_v63 = vpop.f32.mrb[0].mxu1 }
 0x114   : > { %v844_v0 = vpop.f32.mrb[1].mxu1 }
 0x115   : > { %v619_v1 = vpop.f32.mrb[2].mxu1 }
 0x116   : > { %v845_v2 = vpop.f32.mrb[3].mxu1 }
 0x129   : > { %v829_v3 = vpop.f32.mrb[0].mxu0 }
 0x12a   : > { %v830_v5 = vpop.f32.mrb[1].mxu0 }
 0x12b   : > { %v831_v6 = vadd.f32 %v830_v5, %v829_v3  ;;  %v832_v7 = vpop.f32.mrb[2].mxu0 }
 0x12c   : > { %v833_v9 = vpop.f32.mrb[3].mxu0 }
 0x12d   : > { %v617_v10 = vadd.f32 %v831_v6, %v616_v63  ;;  %v834_v11 = vadd.f32 %v833_v9, %v832_v7 }
 0x12f   : > { %v635_v12 = vmul.f32 %v628_v4, %v617_v10  ;;  %v620_v13 = vadd.f32 %v834_v11, %v619_v1 }
 0x131   : > { %v636_v15 = vmul.f32 %v633_v14, %v620_v13  ;;  %v649_v16 = vadd.f32 %v642_v8, %v635_v12 }
 0x133   : > { %v650_v18 = vadd.f32 %v647_v17, %v636_v15  ;;  %v651_v19 = vmax.f32 %v649_v16, 0.0  ;;  %669 = sbr.rel (!%p981_p5) target bundleno = 322 (0x142), region = 81 }
 0x135   : > { %v652_v20 = vmax.f32 %v650_v18, 0.0 }
 0x137   : > { %v811_v21 = vpack.c.bf16 %v652_v20, %v651_v19 }
 0x139   : > { %812 = vst [vmem:[%s372_s30] sm:$0xff] %v811_v21  }
 0x140   : > { %v687_v22 = vld [vmem:[%s372_s30] sm:$0xf]  ;;  %v689_v23 = vld [vmem:[%s372_s30 + $0x4] sm:$0xf] }
 0x141   : > { %688 = vst [vmem:[%s671_s9] sm:$0xf] %v687_v22  ;;  %690 = vst [vmem:[%s671_s9 + $0x8] sm:$0xf] %v689_v23 }
 0x142 PF: > { %p11_p10 = scmp.ge.s32.totalorder %s968_s19, 4   ;;  %s1138_s15 = smov %s917_s16 }
 0x143   : > { %s1139_s16 = smov %s979_s22  ;;  %s1140_s17 = smov %s968_s19 }
 0x144   :  { %13 = sbr.rel (!%p11_p10) target bundleno = 2 (0x2), region = 153 }

// kernel: position_attention_forward.10
= control target key start
LH: loop header
LB: loop body
LE: loop exit
PB: predicated region body
PF: predicated region fallthrough
CT: control target
= control target key end

     0   :  { %v222_v0 = vmov 0   ;;  %vm101_vm0 = vcmask 130048   ;;  %vm184_vm1 = vcmask 519168   ;;  %s299_s1 = inlined_call_operand.vmem [shape: bf16[144,64], index: 1, kind: input, shape index: {}]   ;;  %s300_s0 = inlined_call_operand.vmem [shape: bf16[16,144], index: 0, kind: input, shape index: {}]   ;;  %s301_s2 = inlined_call_operand.vmem [shape: f32[16,1], index: 2, kind: input, shape index: {}]   ;;  %s302_s3 = inlined_call_operand.vmem [shape: f32[16,1], index: 3, kind: input, shape index: {}]   ;;  %s303_s4 = inlined_call_operand.vmem [shape: bf16[16,64], index: 4, kind: output, shape index: {}]  }
   0x1   :  { %105 = vmatprep.subr.bf16.mxu0 %v222_v0  ;;  %v210_v1 = vld [vmem:[%s299_s1] sm:$0xff]   ;;  %208 = vset.pattern.permute.xlu0 %v222_v0  ;;  %v211_v2 = vld [vmem:[%s299_s1 + $0x8] sm:$0xff]   ;;  %v212_v3 = vld [vmem:[%s299_s1 + $0x10] sm:$0xff]  }
   0x2   :  { %209 = vset.pattern.permute.xlu1 %v222_v0  ;;  %106 = vmatpush1.bf16.msra.mxu0 %v210_v1  ;;  %v213_v4 = vld [vmem:[%s299_s1 + $0x18] sm:$0xff]   ;;  %v221_v5 = vld [vmem:[%s300_s0 + $0x4] ss:$8 sps:$4 sm:$0xff]   ;;  %v216_v12 = vld [vmem:[%s299_s1 + $0x30] sm:$0xff]  }
   0x3   :  { %107 = vmatprep.subr.bf16.mxu0 %v222_v0  ;;  %v146_v6 = vld [vmem:[%s301_s2] sm:$0xff]  ;;  %202 = vmatprep.mubr.msk.bf16.mxu0 %vm101_vm0, %v221_v5  ;;  %v147_v8 = vld [vmem:[%s301_s2 + $0x8] sm:$0xff]  ;;  %v217_v13 = vld [vmem:[%s299_s1 + $0x38] sm:$0xff]  }
   0x4   :  { %v160_v7 = vld [vmem:[%s302_s3] sm:$0xff]  ;;  %150 = vperm.xlu0 %208, %v146_v6   ;;  %v161_v9 = vld [vmem:[%s302_s3 + $0x8] sm:$0xff] }
   0x5   :  { %164 = vperm.xlu1 %209, %v160_v7   ;;  %v214_v10 = vld [vmem:[%s299_s1 + $0x20] sm:$0xff]   ;;  %v215_v11 = vld [vmem:[%s299_s1 + $0x28] sm:$0xff]  }
   0x6   :  { %108 = vmatpush1.bf16.msra.mxu0 %v211_v2  ;;  %v218_v14 = vld [vmem:[%s299_s1 + $0x40] sm:$0xff]  }
   0x7   :  { %109 = vmatprep.subr.bf16.mxu0 %v222_v0  ;;  %v219_v15 = vld [vmem:[%s300_s0] ss:$8 sps:$4 sm:$0xff]  }
   0x8   :  { %155 = vperm.xlu0 %208, %v147_v8  }
   0x9   :  { %169 = vperm.xlu1 %209, %v161_v9  }
   0xa   :  { %110 = vmatpush1.bf16.msra.mxu0 %v212_v3 }
   0xb   :  { %111 = vmatprep.subr.bf16.mxu0 %v222_v0 }
   0xe   :  { %112 = vmatpush1.bf16.msra.mxu0 %v213_v4 }
   0xf   :  { %113 = vmatprep.subr.bf16.mxu0 %v222_v0 }
  0x12   :  { %114 = vmatpush1.bf16.msra.mxu0 %v214_v10 }
  0x13   :  { %115 = vmatprep.subr.bf16.mxu0 %v222_v0 }
  0x16   :  { %116 = vmatpush1.bf16.msra.mxu0 %v215_v11 }
  0x17   :  { %117 = vmatprep.subr.bf16.mxu0 %v222_v0 }
  0x1a   :  { %118 = vmatpush1.bf16.msra.mxu0 %v216_v12 }
  0x1b   :  { %119 = vmatprep.subr.bf16.mxu0 %v222_v0 }
  0x1e   :  { %120 = vmatpush1.bf16.msra.mxu0 %v217_v13 }
  0x1f   :  { %121 = vmatprep.subr.bf16.mxu0 %v222_v0 }
  0x22   :  { %122 = vmatpush1.bf16.msra.mxu0 %v218_v14 }
  0x25   :  { %138 = vmatmul.mubr.bf16.vlgmr.msra.gmra.mrb[0].mxu0 %v219_v15 }
  0x83   :  { %v151_v16 = vpop.permute.xlu0 %150 }
  0x84   :  { %v165_v17 = vpop.permute.xlu1 %164 }
  0x87   :  { %v156_v21 = vpop.permute.xlu0 %155 }
  0x88   :  { %v170_v26 = vpop.permute.xlu1 %169 }
  0xf8   :  { %v139_v18 = vpop.f32.mrb[0].mxu0 }
  0xf9   :  { %v158_v19 = vmul.f32 %v151_v16, %v139_v18  ;;  %v141_v20 = vpop.f32.mrb[1].mxu0 }
  0xfa   :  { %v142_v22 = vpop.f32.mrb[2].mxu0 }
  0xfb   :  { %v172_v23 = vadd.f32 %v165_v17, %v158_v19  ;;  %v159_v24 = vmul.f32 %v156_v21, %v142_v22  ;;  %v144_v25 = vpop.f32.mrb[3].mxu0 }
  0xfd   :  { %v174_v27 = vmax.f32 %v172_v23, 0.0  ;;  %v173_v28 = vadd.f32 %v170_v26, %v159_v24 }
  0xff   :  { %v205_v29 = vpack.c.bf16 %v174_v27, %v174_v27  ;;  %v175_v30 = vmax.f32 %v173_v28, 0.0 }
 0x101   :  { %185 = vst.msk [vmem:[%s303_s4] sm:$0xf] %vm184_vm1, %v205_v29  ;;  %v206_v31 = vpack.c.bf16 %v175_v30, %v175_v30 }
 0x103   :  { %186 = vst.msk [vmem:[%s303_s4 + $0x4] sm:$0xf] %vm184_vm1, %v206_v31 }

// kernel: position_attention_forward.11
= control target key start
LH: loop header
LB: loop body
LE: loop exit
PB: predicated region body
PF: predicated region fallthrough
CT: control target
= control target key end

     0   :  { %v222_v0 = vmov 0   ;;  %vm101_vm0 = vcmask 130048   ;;  %vm184_vm1 = vcmask 125952   ;;  %s299_s1 = inlined_call_operand.vmem [shape: bf16[144,16], index: 1, kind: input, shape index: {}]   ;;  %s300_s0 = inlined_call_operand.vmem [shape: bf16[16,144], index: 0, kind: input, shape index: {}]   ;;  %s301_s2 = inlined_call_operand.vmem [shape: f32[16,1], index: 2, kind: input, shape index: {}]   ;;  %s302_s3 = inlined_call_operand.vmem [shape: f32[16,1], index: 3, kind: input, shape index: {}]   ;;  %s303_s4 = inlined_call_operand.vmem [shape: bf16[16,16], index: 4, kind: output, shape index: {}]  }
   0x1   :  { %105 = vmatprep.subr.bf16.mxu0 %v222_v0  ;;  %v210_v1 = vld [vmem:[%s299_s1] sm:$0xff]   ;;  %208 = vset.pattern.permute.xlu0 %v222_v0  ;;  %v211_v2 = vld [vmem:[%s299_s1 + $0x8] sm:$0xff]   ;;  %v212_v3 = vld [vmem:[%s299_s1 + $0x10] sm:$0xff]  }
   0x2   :  { %209 = vset.pattern.permute.xlu1 %v222_v0  ;;  %106 = vmatpush1.bf16.msra.mxu0 %v210_v1  ;;  %v213_v4 = vld [vmem:[%s299_s1 + $0x18] sm:$0xff]   ;;  %v221_v5 = vld [vmem:[%s300_s0 + $0x4] ss:$8 sps:$4 sm:$0xff]   ;;  %v216_v12 = vld [vmem:[%s299_s1 + $0x30] sm:$0xff]  }
   0x3   :  { %107 = vmatprep.subr.bf16.mxu0 %v222_v0  ;;  %v146_v6 = vld [vmem:[%s301_s2] sm:$0xff]  ;;  %202 = vmatprep.mubr.msk.bf16.mxu0 %vm101_vm0, %v221_v5  ;;  %v147_v8 = vld [vmem:[%s301_s2 + $0x8] sm:$0xff]  ;;  %v217_v13 = vld [vmem:[%s299_s1 + $0x38] sm:$0xff]  }
   0x4   :  { %v160_v7 = vld [vmem:[%s302_s3] sm:$0xff]  ;;  %150 = vperm.xlu0 %208, %v146_v6   ;;  %v161_v9 = vld [vmem:[%s302_s3 + $0x8] sm:$0xff] }
   0x5   :  { %164 = vperm.xlu1 %209, %v160_v7   ;;  %v214_v10 = vld [vmem:[%s299_s1 + $0x20] sm:$0xff]   ;;  %v215_v11 = vld [vmem:[%s299_s1 + $0x28] sm:$0xff]  }
   0x6   :  { %108 = vmatpush1.bf16.msra.mxu0 %v211_v2  ;;  %v218_v14 = vld [vmem:[%s299_s1 + $0x40] sm:$0xff]  }
   0x7   :  { %109 = vmatprep.subr.bf16.mxu0 %v222_v0  ;;  %v219_v15 = vld [vmem:[%s300_s0] ss:$8 sps:$4 sm:$0xff]  }
   0x8   :  { %155 = vperm.xlu0 %208, %v147_v8  }
   0x9   :  { %169 = vperm.xlu1 %209, %v161_v9  }
   0xa   :  { %110 = vmatpush1.bf16.msra.mxu0 %v212_v3 }
   0xb   :  { %111 = vmatprep.subr.bf16.mxu0 %v222_v0 }
   0xe   :  { %112 = vmatpush1.bf16.msra.mxu0 %v213_v4 }
   0xf   :  { %113 = vmatprep.subr.bf16.mxu0 %v222_v0 }
  0x12   :  { %114 = vmatpush1.bf16.msra.mxu0 %v214_v10 }
  0x13   :  { %115 = vmatprep.subr.bf16.mxu0 %v222_v0 }
  0x16   :  { %116 = vmatpush1.bf16.msra.mxu0 %v215_v11 }
  0x17   :  { %117 = vmatprep.subr.bf16.mxu0 %v222_v0 }
  0x1a   :  { %118 = vmatpush1.bf16.msra.mxu0 %v216_v12 }
  0x1b   :  { %119 = vmatprep.subr.bf16.mxu0 %v222_v0 }
  0x1e   :  { %120 = vmatpush1.bf16.msra.mxu0 %v217_v13 }
  0x1f   :  { %121 = vmatprep.subr.bf16.mxu0 %v222_v0 }
  0x22   :  { %122 = vmatpush1.bf16.msra.mxu0 %v218_v14 }
  0x25   :  { %138 = vmatmul.mubr.bf16.vlgmr.msra.gmra.mrb[0].mxu0 %v219_v15 }
  0x83   :  { %v151_v16 = vpop.permute.xlu0 %150 }
  0x84   :  { %v165_v17 = vpop.permute.xlu1 %164 }
  0x87   :  { %v156_v21 = vpop.permute.xlu0 %155 }
  0x88   :  { %v170_v26 = vpop.permute.xlu1 %169 }
  0xf8   :  { %v139_v18 = vpop.f32.mrb[0].mxu0 }
  0xf9   :  { %v158_v19 = vmul.f32 %v151_v16, %v139_v18  ;;  %v141_v20 = vpop.f32.mrb[1].mxu0 }
  0xfa   :  { %v142_v22 = vpop.f32.mrb[2].mxu0 }
  0xfb   :  { %v172_v23 = vadd.f32 %v165_v17, %v158_v19  ;;  %v159_v24 = vmul.f32 %v156_v21, %v142_v22  ;;  %v144_v25 = vpop.f32.mrb[3].mxu0 }
  0xfd   :  { %v174_v27 = vmax.f32 %v172_v23, 0.0  ;;  %v173_v28 = vadd.f32 %v170_v26, %v159_v24 }
  0xff   :  { %v205_v29 = vpack.c.bf16 %v174_v27, %v174_v27  ;;  %v175_v30 = vmax.f32 %v173_v28, 0.0 }
 0x101   :  { %185 = vst.msk [vmem:[%s303_s4] sm:$0xf] %vm184_vm1, %v205_v29  ;;  %v206_v31 = vpack.c.bf16 %v175_v30, %v175_v30 }
 0x103   :  { %186 = vst.msk [vmem:[%s303_s4 + $0x4] sm:$0xf] %vm184_vm1, %v206_v31 }

// kernel: position_attention_forward.12
= control target key start
LH: loop header
LB: loop body
LE: loop exit
PB: predicated region body
PF: predicated region fallthrough
CT: control target
= control target key end

     0   :  { %v222_v0 = vmov 0   ;;  %vm101_vm0 = vcmask 130048   ;;  %vm184_vm1 = vcmask 27648   ;;  %s299_s1 = inlined_call_operand.vmem [shape: bf16[144,4], index: 1, kind: input, shape index: {}]   ;;  %s300_s0 = inlined_call_operand.vmem [shape: bf16[16,144], index: 0, kind: input, shape index: {}]   ;;  %s301_s2 = inlined_call_operand.vmem [shape: f32[16,1], index: 2, kind: input, shape index: {}]   ;;  %s302_s3 = inlined_call_operand.vmem [shape: f32[16,1], index: 3, kind: input, shape index: {}]   ;;  %s303_s4 = inlined_call_operand.vmem [shape: bf16[16,4], index: 4, kind: output, shape index: {}]  }
   0x1   :  { %105 = vmatprep.subr.bf16.mxu0 %v222_v0  ;;  %v210_v1 = vld [vmem:[%s299_s1] sm:$0xff]   ;;  %208 = vset.pattern.permute.xlu0 %v222_v0  ;;  %v211_v2 = vld [vmem:[%s299_s1 + $0x8] sm:$0xff]   ;;  %v212_v3 = vld [vmem:[%s299_s1 + $0x10] sm:$0xff]  }
   0x2   :  { %209 = vset.pattern.permute.xlu1 %v222_v0  ;;  %106 = vmatpush1.bf16.msra.mxu0 %v210_v1  ;;  %v213_v4 = vld [vmem:[%s299_s1 + $0x18] sm:$0xff]   ;;  %v221_v5 = vld [vmem:[%s300_s0 + $0x4] ss:$8 sps:$4 sm:$0xff]   ;;  %v216_v12 = vld [vmem:[%s299_s1 + $0x30] sm:$0xff]  }
   0x3   :  { %107 = vmatprep.subr.bf16.mxu0 %v222_v0  ;;  %v146_v6 = vld [vmem:[%s301_s2] sm:$0xff]  ;;  %202 = vmatprep.mubr.msk.bf16.mxu0 %vm101_vm0, %v221_v5  ;;  %v147_v8 = vld [vmem:[%s301_s2 + $0x8] sm:$0xff]  ;;  %v217_v13 = vld [vmem:[%s299_s1 + $0x38] sm:$0xff]  }
   0x4   :  { %v160_v7 = vld [vmem:[%s302_s3] sm:$0xff]  ;;  %150 = vperm.xlu0 %208, %v146_v6   ;;  %v161_v9 = vld [vmem:[%s302_s3 + $0x8] sm:$0xff] }
   0x5   :  { %164 = vperm.xlu1 %209, %v160_v7   ;;  %v214_v10 = vld [vmem:[%s299_s1 + $0x20] sm:$0xff]   ;;  %v215_v11 = vld [vmem:[%s299_s1 + $0x28] sm:$0xff]  }
   0x6   :  { %108 = vmatpush1.bf16.msra.mxu0 %v211_v2  ;;  %v218_v14 = vld [vmem:[%s299_s1 + $0x40] sm:$0xff]  }
   0x7   :  { %109 = vmatprep.subr.bf16.mxu0 %v222_v0  ;;  %v219_v15 = vld [vmem:[%s300_s0] ss:$8 sps:$4 sm:$0xff]  }
   0x8   :  { %155 = vperm.xlu0 %208, %v147_v8  }
   0x9   :  { %169 = vperm.xlu1 %209, %v161_v9  }
   0xa   :  { %110 = vmatpush1.bf16.msra.mxu0 %v212_v3 }
   0xb   :  { %111 = vmatprep.subr.bf16.mxu0 %v222_v0 }
   0xe   :  { %112 = vmatpush1.bf16.msra.mxu0 %v213_v4 }
   0xf   :  { %113 = vmatprep.subr.bf16.mxu0 %v222_v0 }
  0x12   :  { %114 = vmatpush1.bf16.msra.mxu0 %v214_v10 }
  0x13   :  { %115 = vmatprep.subr.bf16.mxu0 %v222_v0 }
  0x16   :  { %116 = vmatpush1.bf16.msra.mxu0 %v215_v11 }
  0x17   :  { %117 = vmatprep.subr.bf16.mxu0 %v222_v0 }
  0x1a   :  { %118 = vmatpush1.bf16.msra.mxu0 %v216_v12 }
  0x1b   :  { %119 = vmatprep.subr.bf16.mxu0 %v222_v0 }
  0x1e   :  { %120 = vmatpush1.bf16.msra.mxu0 %v217_v13 }
  0x1f   :  { %121 = vmatprep.subr.bf16.mxu0 %v222_v0 }
  0x22   :  { %122 = vmatpush1.bf16.msra.mxu0 %v218_v14 }
  0x25   :  { %138 = vmatmul.mubr.bf16.vlgmr.msra.gmra.mrb[0].mxu0 %v219_v15 }
  0x83   :  { %v151_v16 = vpop.permute.xlu0 %150 }
  0x84   :  { %v165_v17 = vpop.permute.xlu1 %164 }
  0x87   :  { %v156_v21 = vpop.permute.xlu0 %155 }
  0x88   :  { %v170_v26 = vpop.permute.xlu1 %169 }
  0xf8   :  { %v139_v18 = vpop.f32.mrb[0].mxu0 }
  0xf9   :  { %v158_v19 = vmul.f32 %v151_v16, %v139_v18  ;;  %v141_v20 = vpop.f32.mrb[1].mxu0 }
  0xfa   :  { %v142_v22 = vpop.f32.mrb[2].mxu0 }
  0xfb   :  { %v172_v23 = vadd.f32 %v165_v17, %v158_v19  ;;  %v159_v24 = vmul.f32 %v156_v21, %v142_v22  ;;  %v144_v25 = vpop.f32.mrb[3].mxu0 }
  0xfd   :  { %v174_v27 = vmax.f32 %v172_v23, 0.0  ;;  %v173_v28 = vadd.f32 %v170_v26, %v159_v24 }
  0xff   :  { %v205_v29 = vpack.c.bf16 %v174_v27, %v174_v27  ;;  %v175_v30 = vmax.f32 %v173_v28, 0.0 }
 0x101   :  { %185 = vst.msk [vmem:[%s303_s4] sm:$0xf] %vm184_vm1, %v205_v29  ;;  %v206_v31 = vpack.c.bf16 %v175_v30, %v175_v30 }
 0x103   :  { %186 = vst.msk [vmem:[%s303_s4 + $0x4] sm:$0xf] %vm184_vm1, %v206_v31 }

// kernel: position_attention_forward.15
= control target key start
LH: loop header
LB: loop body
LE: loop exit
PB: predicated region body
PF: predicated region fallthrough
CT: control target
= control target key end

     0   :  { %s701_s15 = smov 0   ;;  %s703_s16 = smov 0   ;;  %s823_s0 = inlined_call_operand.vmem [shape: bf16[16,144], index: 0, kind: input, shape index: {}]   ;;  %s824_s1 = inlined_call_operand.vmem [shape: bf16[144,256], index: 1, kind: input, shape index: {}]   ;;  %s825_s2 = inlined_call_operand.vmem [shape: f32[16,1], index: 2, kind: input, shape index: {}]   ;;  %s826_s3 = inlined_call_operand.vmem [shape: f32[16,1], index: 3, kind: input, shape index: {}]   ;;  %s827_s4 = inlined_call_operand.vmem [shape: bf16[16,256], index: 4, kind: output, shape index: {}]  }
   0x1   :  { %s705_s17 = smov 0  }
   0x2 LB: > { %s578_s18 = sadd.s32 4294967295, %s673_s17   ;;  %s718_s19 = sadd.s32 1, %s673_s17   ;;  %s673_s17 = sphi %s705_s17, %s831_s17   ;;  %s669_s16 = sphi %s703_s16, %s830_s16   ;;  %s665_s15 = sphi %s701_s15, %s829_s15  }
   0x3   : > { %s39_s20 = ssub.s32 %s673_s17, %s718_s19  ;;  %s42_s21 = sadd.s32 1, %s669_s16 }
   0x4   : > { %p40_p0 = scmp.eq.s32.totalorder %s39_s20, 0  ;;  %p49_p1 = scmp.ne.s32.totalorder %s669_s16, %s665_s15 }
   0x5   : > { %p50_p2 = scmp.eq.s32.totalorder %s673_s17, 0  ;;  %p121_p3 = scmp.eq.s32.totalorder %s578_s18, 1 }
   0x6   : > { %s729_s22 = scalar_select %p40_p0, %s669_s16, %s42_s21  }
   0x7   : > { %p51_p4 = por %p50_p2, %p49_p1  ;;  %p731_p5 = por %p121_p3, %p49_p1 }
   0x8   : > { %p581_p6 = scmp.ge.s32.totalorder %s673_s17, 2 }
   0xa   : > { %152 = sbr.rel (%p581_p6) target bundleno = 33 (0x21), region = 28 }
  0x11   : > { %155 = sbr.rel (!%p51_p4) target bundleno = 33 (0x21), region = 32  ;;  %s157_s24 = sand.u32 (%p51_p4), 1, %s669_s16  }
  0x12   : > { %s582_s25 = sshll.u32 (%p51_p4), %s673_s17, 2  ;;  %s610_s26 = smul.u32 (%p51_p4), 72, %s157_s24 }
  0x13   : > { %s741_s29 = scalar_lea.vmem (%p51_p4), %s824_s1, %s582_s25 }
  0x14   : > { %v177_v0 = vld [vmem:[%s741_s29] sm:$0xf] (%p51_p4)  ;;  %v179_v1 = vld [vmem:[%s741_s29 + $0x8] sm:$0xf] (%p51_p4)  ;;  %v181_v2 = vld [vmem:[%s741_s29 + $0x10] sm:$0xf] (%p51_p4) }
  0x15   : > { %v183_v3 = vld [vmem:[%s741_s29 + $0x18] sm:$0xf] (%p51_p4)  ;;  %v185_v4 = vld [vmem:[%s741_s29 + $0x20] sm:$0xf] (%p51_p4)  ;;  %s748_s30 = scalar_lea.vmem (%p51_p4), [#allocation2], %s610_s26 }
  0x16   : > { %178 = vst [vmem:[%s748_s30] sm:$0xf] (%p51_p4), %v177_v0  ;;  %180 = vst [vmem:[%s748_s30 + $0x4] sm:$0xf] (%p51_p4), %v179_v1  ;;  %v187_v5 = vld [vmem:[%s741_s29 + $0x28] sm:$0xf] (%p51_p4) }
  0x17   : > { %182 = vst [vmem:[%s748_s30 + $0x8] sm:$0xf] (%p51_p4), %v181_v2  ;;  %184 = vst [vmem:[%s748_s30 + $0xc] sm:$0xf] (%p51_p4), %v183_v3  ;;  %v189_v6 = vld [vmem:[%s741_s29 + $0x30] sm:$0xf] (%p51_p4) }
  0x18   : > { %186 = vst [vmem:[%s748_s30 + $0x10] sm:$0xf] %v185_v4  ;;  %v191_v7 = vld [vmem:[%s741_s29 + $0x38] sm:$0xf]  ;;  %188 = vst [vmem:[%s748_s30 + $0x14] sm:$0xf] %v187_v5 }
  0x19   : > { %190 = vst [vmem:[%s748_s30 + $0x18] sm:$0xf] %v189_v6  ;;  %192 = vst [vmem:[%s748_s30 + $0x1c] sm:$0xf] %v191_v7  ;;  %v193_v8 = vld [vmem:[%s741_s29 + $0x40] sm:$0xf] }
  0x1a   : > { %v195_v9 = vld [vmem:[%s741_s29 + $0x48] sm:$0xf]  ;;  %v197_v10 = vld [vmem:[%s741_s29 + $0x50] sm:$0xf]  ;;  %194 = vst [vmem:[%s748_s30 + $0x20] sm:$0xf] %v193_v8 }
  0x1b   : > { %196 = vst [vmem:[%s748_s30 + $0x24] sm:$0xf] %v195_v9  ;;  %198 = vst [vmem:[%s748_s30 + $0x28] sm:$0xf] %v197_v10  ;;  %v199_v11 = vld [vmem:[%s741_s29 + $0x58] sm:$0xf] }
  0x1c   : > { %v201_v12 = vld [vmem:[%s741_s29 + $0x60] sm:$0xf]  ;;  %v203_v13 = vld [vmem:[%s741_s29 + $0x68] sm:$0xf]  ;;  %200 = vst [vmem:[%s748_s30 + $0x2c] sm:$0xf] %v199_v11 }
  0x1d   : > { %202 = vst [vmem:[%s748_s30 + $0x30] sm:$0xf] %v201_v12  ;;  %204 = vst [vmem:[%s748_s30 + $0x34] sm:$0xf] %v203_v13  ;;  %v205_v14 = vld [vmem:[%s741_s29 + $0x70] sm:$0xf] }
  0x1e   : > { %v207_v15 = vld [vmem:[%s741_s29 + $0x78] sm:$0xf]  ;;  %v209_v16 = vld [vmem:[%s741_s29 + $0x80] sm:$0xf]  ;;  %206 = vst [vmem:[%s748_s30 + $0x38] sm:$0xf] %v205_v14 }
  0x1f   : > { %208 = vst [vmem:[%s748_s30 + $0x3c] sm:$0xf] %v207_v15  ;;  %210 = vst [vmem:[%s748_s30 + $0x40] sm:$0xf] %v209_v16  ;;  %v211_v17 = vld [vmem:[%s741_s29 + $0x88] sm:$0xf] }
  0x20   : > { %212 = vst [vmem:[%s748_s30 + $0x44] sm:$0xf] %v211_v17 }
  0x21 PF: > { %p583_p7 = scmp.ge.s32.totalorder %s673_s17, 1  ;;  %p270_p8 = scmp.lt.s32.totalorder %s673_s17, 3 }
  0x23   : > { %p271_p9 = pnand %p583_p7, %p270_p8 }
  0x24   : > { %s277_s5 = sand.u32 (!%p271_p9), 1, %s665_s15   ;;  %v675_v18 = vmov (!%p271_p9), 0   ;;  %v650_v19 = vld [vmem:[%s823_s0 + $0x4] ss:$8 sps:$4 sm:$0xff] (!%p271_p9)   ;;  %vm385_vm0 = vcmask (!%p271_p9), 130048  }
  0x25   : > { %274 = sbr.rel (%p271_p9) target bundleno = 308 (0x134), region = 73  ;;  %389 = vmatprep.subr.bf16.mxu0 (!%p271_p9), %v675_v18  ;;  %637 = vset.pattern.permute.xlu0 (!%p271_p9), %v675_v18  ;;  %v430_v20 = vld [vmem:[%s825_s2] sm:$0xff] (!%p271_p9)  ;;  %v431_v22 = vld [vmem:[%s825_s2 + $0x8] sm:$0xff] (!%p271_p9)  ;;  %s584_s27 = sshll.u32 (!%p271_p9), %s277_s5, 3 }
  0x26   : > { %s611_s6 = smul.u32 (!%p271_p9), 72, %s277_s5  ;;  %v444_v21 = vld [vmem:[%s826_s3] sm:$0xff] (!%p271_p9)  ;;  %434 = vperm.xlu0 (!%p271_p9), %637, %v430_v20   ;;  %638 = vset.pattern.permute.xlu1 (!%p271_p9), %v675_v18  ;;  %v445_v23 = vld [vmem:[%s826_s3 + $0x8] sm:$0xff] (!%p271_p9)  ;;  %s300_s28 = scalar_lea.vmem (!%p271_p9), [#allocation3], %s584_s27 }
  0x27   : > { %596 = vmatprep.mubr.msk.bf16.mxu0 (!%p271_p9), %vm385_vm0, %v650_v19  ;;  %448 = vperm.xlu1 (!%p271_p9), %638, %v444_v21   ;;  %v648_v33 = vld [vmem:[%s823_s0] ss:$8 sps:$4 sm:$0xff] (!%p271_p9)  }
  0x28   : > { %s279_s24 = scalar_lea.vmem (!%p271_p9), [#allocation2], %s611_s6 }
  0x29   : > { %v639_v24 = vld [vmem:[%s279_s24] sm:$0xff] (!%p271_p9)   ;;  %v640_v25 = vld [vmem:[%s279_s24 + $0x8] sm:$0xff] (!%p271_p9)   ;;  %v641_v26 = vld [vmem:[%s279_s24 + $0x10] sm:$0xff] (!%p271_p9)  }
  0x2a   : > { %390 = vmatpush1.bf16.msra.mxu0 (!%p271_p9), %v639_v24  ;;  %439 = vperm.xlu0 (!%p271_p9), %637, %v431_v22   ;;  %v642_v27 = vld [vmem:[%s279_s24 + $0x18] sm:$0xff] (!%p271_p9)   ;;  %v643_v28 = vld [vmem:[%s279_s24 + $0x20] sm:$0xff] (!%p271_p9)   ;;  %v644_v29 = vld [vmem:[%s279_s24 + $0x28] sm:$0xff] (!%p271_p9)  }
  0x2b   : > { %391 = vmatprep.subr.bf16.mxu0 (!%p271_p9), %v675_v18  ;;  %453 = vperm.xlu1 (!%p271_p9), %638, %v445_v23   ;;  %v645_v30 = vld [vmem:[%s279_s24 + $0x30] sm:$0xff] (!%p271_p9)   ;;  %v646_v31 = vld [vmem:[%s279_s24 + $0x38] sm:$0xff] (!%p271_p9)   ;;  %v647_v32 = vld [vmem:[%s279_s24 + $0x40] sm:$0xff] (!%p271_p9)  }
  0x2c   : > { %s600_s29 = sshll.u32 (%p731_p5), %s578_s18, 2 }
  0x2d   : > { %s478_s7 = scalar_lea.vmem (%p731_p5), %s827_s4, %s600_s29 }
  0x2e   : > { %392 = vmatpush1.bf16.msra.mxu0 %v640_v25 }
  0x2f   : > { %393 = vmatprep.subr.bf16.mxu0 %v675_v18 }
  0x32   : > { %394 = vmatpush1.bf16.msra.mxu0 %v641_v26 }
  0x33   : > { %395 = vmatprep.subr.bf16.mxu0 %v675_v18 }
  0x36   : > { %396 = vmatpush1.bf16.msra.mxu0 %v642_v27 }
  0x37   : > { %397 = vmatprep.subr.bf16.mxu0 %v675_v18 }
  0x3a   : > { %398 = vmatpush1.bf16.msra.mxu0 %v643_v28 }
  0x3b   : > { %399 = vmatprep.subr.bf16.mxu0 %v675_v18 }
  0x3e   : > { %400 = vmatpush1.bf16.msra.mxu0 %v644_v29 }
  0x3f   : > { %401 = vmatprep.subr.bf16.mxu0 %v675_v18 }
  0x42   : > { %402 = vmatpush1.bf16.msra.mxu0 %v645_v30 }
  0x43   : > { %403 = vmatprep.subr.bf16.mxu0 %v675_v18 }
  0x46   : > { %404 = vmatpush1.bf16.msra.mxu0 %v646_v31 }
  0x47   : > { %405 = vmatprep.subr.bf16.mxu0 %v675_v18 }
  0x4a   : > { %406 = vmatpush1.bf16.msra.mxu0 %v647_v32 }
  0x4d   : > { %422 = vmatmul.mubr.bf16.vlgmr.msra.gmra.mrb[0].mxu0 %v648_v33 }
  0xa5   : > { %v435_v34 = vpop.permute.xlu0 %434 }
  0xa6   : > { %v449_v35 = vpop.permute.xlu1 %448 }
  0xa9   : > { %v440_v39 = vpop.permute.xlu0 %439 }
  0xaa   : > { %v454_v44 = vpop.permute.xlu1 %453 }
 0x120   : > { %v423_v36 = vpop.f32.mrb[0].mxu0 }
 0x121   : > { %v442_v37 = vmul.f32 %v435_v34, %v423_v36  ;;  %v425_v38 = vpop.f32.mrb[1].mxu0 }
 0x122   : > { %v426_v40 = vpop.f32.mrb[2].mxu0 }
 0x123   : > { %v456_v41 = vadd.f32 %v449_v35, %v442_v37  ;;  %v443_v42 = vmul.f32 %v440_v39, %v426_v40  ;;  %v428_v43 = vpop.f32.mrb[3].mxu0 }
 0x125   : > { %v457_v45 = vadd.f32 %v454_v44, %v443_v42  ;;  %v458_v46 = vmax.f32 %v456_v41, 0.0  ;;  %476 = sbr.rel (!%p731_p5) target bundleno = 308 (0x134), region = 81 }
 0x127   : > { %v459_v47 = vmax.f32 %v457_v45, 0.0 }
 0x129   : > { %v608_v48 = vpack.c.bf16 %v459_v47, %v458_v46 }
 0x12b   : > { %609 = vst [vmem:[%s300_s28] sm:$0xff] %v608_v48  }
 0x132   : > { %v494_v49 = vld [vmem:[%s300_s28] sm:$0xf]  ;;  %v496_v50 = vld [vmem:[%s300_s28 + $0x4] sm:$0xf] }
 0x133   : > { %495 = vst [vmem:[%s478_s7] sm:$0xf] %v494_v49  ;;  %497 = vst [vmem:[%s478_s7 + $0x8] sm:$0xf] %v496_v50 }
 0x134 PF: > { %p11_p10 = scmp.ge.s32.totalorder %s718_s19, 4   ;;  %s829_s15 = smov %s669_s16 }
 0x135   : > { %s830_s16 = smov %s729_s22  ;;  %s831_s17 = smov %s718_s19 }
 0x136   :  { %13 = sbr.rel (!%p11_p10) target bundleno = 2 (0x2), region = 153 }

// kernel: position_attention_forward.16
= control target key start
LH: loop header
LB: loop body
LE: loop exit
PB: predicated region body
PF: predicated region fallthrough
CT: control target
= control target key end

     0   :  { %s875_s15 = smov 0   ;;  %s877_s16 = smov 0   ;;  %s1015_s0 = inlined_call_operand.vmem [shape: bf16[32,144], index: 0, kind: input, shape index: {}]   ;;  %s1016_s1 = inlined_call_operand.vmem [shape: bf16[144,512], index: 1, kind: input, shape index: {}]   ;;  %s1017_s2 = inlined_call_operand.vmem [shape: f32[32,1], index: 2, kind: input, shape index: {}]   ;;  %s1018_s3 = inlined_call_operand.vmem [shape: f32[32,1], index: 3, kind: input, shape index: {}]   ;;  %s1019_s4 = inlined_call_operand.vmem [shape: bf16[32,512], index: 4, kind: output, shape index: {}]  }
   0x1   :  { %s879_s17 = smov 0  }
   0x2 LB: > { %s698_s18 = sadd.s32 4294967295, %s847_s17   ;;  %s892_s19 = sadd.s32 1, %s847_s17   ;;  %s847_s17 = sphi %s879_s17, %s1023_s17   ;;  %s843_s16 = sphi %s877_s16, %s1022_s16   ;;  %s839_s15 = sphi %s875_s15, %s1021_s15  }
   0x3   : > { %s39_s20 = ssub.s32 %s847_s17, %s892_s19  ;;  %s42_s21 = sadd.s32 1, %s843_s16 }
   0x4   : > { %p40_p0 = scmp.eq.s32.totalorder %s39_s20, 0  ;;  %p49_p1 = scmp.ne.s32.totalorder %s843_s16, %s839_s15 }
   0x5   : > { %p50_p2 = scmp.eq.s32.totalorder %s847_s17, 0  ;;  %p121_p3 = scmp.eq.s32.totalorder %s698_s18, 1 }
   0x6   : > { %s903_s22 = scalar_select %p40_p0, %s843_s16, %s42_s21  }
   0x7   : > { %p51_p4 = por %p50_p2, %p49_p1  ;;  %p905_p5 = por %p121_p3, %p49_p1 }
   0x8   : > { %p701_p6 = scmp.ge.s32.totalorder %s847_s17, 2 }
   0xa   : > { %152 = sbr.rel (%p701_p6) target bundleno = 30 (0x1e), region = 28 }
  0x11   : > { %155 = sbr.rel (!%p51_p4) target bundleno = 30 (0x1e), region = 32  ;;  %s157_s24 = sand.u32 (%p51_p4), 1, %s843_s16  }
  0x12   : > { %s739_s25 = sshll.u32 (%p51_p4), %s847_s17, 3  ;;  %s763_s26 = smul.u32 (%p51_p4), 144, %s157_s24 }
  0x13   : > { %s915_s29 = scalar_lea.vmem (%p51_p4), %s1016_s1, %s739_s25 }
  0x14   : > { %v224_v0 = vld [vmem:[%s915_s29] sm:$0xff] (%p51_p4)  ;;  %v226_v1 = vld [vmem:[%s915_s29 + $0x10] sm:$0xff] (%p51_p4)  ;;  %s159_s30 = scalar_lea.vmem (%p51_p4), [#allocation2], %s763_s26 }
  0x15   : > { %v228_v2 = vld [vmem:[%s915_s29 + $0x20] sm:$0xff] (%p51_p4)  ;;  %v230_v3 = vld [vmem:[%s915_s29 + $0x30] sm:$0xff] (%p51_p4)  ;;  %225 = vst [vmem:[%s159_s30] sm:$0xff] (%p51_p4), %v224_v0  ;;  %227 = vst [vmem:[%s159_s30 + $0x8] sm:$0xff] (%p51_p4), %v226_v1 }
  0x16   : > { %v232_v4 = vld [vmem:[%s915_s29 + $0x40] sm:$0xff] (%p51_p4)  ;;  %v234_v5 = vld [vmem:[%s915_s29 + $0x50] sm:$0xff] (%p51_p4)  ;;  %229 = vst [vmem:[%s159_s30 + $0x10] sm:$0xff] (%p51_p4), %v228_v2  ;;  %231 = vst [vmem:[%s159_s30 + $0x18] sm:$0xff] (%p51_p4), %v230_v3 }
  0x17   : > { %233 = vst [vmem:[%s159_s30 + $0x20] sm:$0xff] (%p51_p4), %v232_v4  ;;  %235 = vst [vmem:[%s159_s30 + $0x28] sm:$0xff] (%p51_p4), %v234_v5  ;;  %v236_v6 = vld [vmem:[%s915_s29 + $0x60] sm:$0xff] (%p51_p4)  ;;  %v238_v7 = vld [vmem:[%s915_s29 + $0x70] sm:$0xff] (%p51_p4) }
  0x18   : > { %v240_v8 = vld [vmem:[%s915_s29 + $0x80] sm:$0xff]  ;;  %237 = vst [vmem:[%s159_s30 + $0x30] sm:$0xff] %v236_v6  ;;  %239 = vst [vmem:[%s159_s30 + $0x38] sm:$0xff] %v238_v7  ;;  %v242_v9 = vld [vmem:[%s915_s29 + $0x90] sm:$0xff] }
  0x19   : > { %241 = vst [vmem:[%s159_s30 + $0x40] sm:$0xff] %v240_v8  ;;  %v244_v10 = vld [vmem:[%s915_s29 + $0xa0] sm:$0xff]  ;;  %v246_v11 = vld [vmem:[%s915_s29 + $0xb0] sm:$0xff]  ;;  %243 = vst [vmem:[%s159_s30 + $0x48] sm:$0xff] %v242_v9 }
  0x1a   : > { %245 = vst [vmem:[%s159_s30 + $0x50] sm:$0xff] %v244_v10  ;;  %247 = vst [vmem:[%s159_s30 + $0x58] sm:$0xff] %v246_v11  ;;  %v248_v12 = vld [vmem:[%s915_s29 + $0xc0] sm:$0xff]  ;;  %v250_v13 = vld [vmem:[%s915_s29 + $0xd0] sm:$0xff] }
  0x1b   : > { %v252_v14 = vld [vmem:[%s915_s29 + $0xe0] sm:$0xff]  ;;  %249 = vst [vmem:[%s159_s30 + $0x60] sm:$0xff] %v248_v12  ;;  %251 = vst [vmem:[%s159_s30 + $0x68] sm:$0xff] %v250_v13  ;;  %v254_v15 = vld [vmem:[%s915_s29 + $0xf0] sm:$0xff] }
  0x1c   : > { %253 = vst [vmem:[%s159_s30 + $0x70] sm:$0xff] %v252_v14  ;;  %v256_v16 = vld [vmem:[%s915_s29 + $0x100] sm:$0xff]  ;;  %v258_v17 = vld [vmem:[%s915_s29 + $0x110] sm:$0xff]  ;;  %255 = vst [vmem:[%s159_s30 + $0x78] sm:$0xff] %v254_v15 }
  0x1d   : > { %257 = vst [vmem:[%s159_s30 + $0x80] sm:$0xff] %v256_v16  ;;  %259 = vst [vmem:[%s159_s30 + $0x88] sm:$0xff] %v258_v17 }
  0x1e PF: > { %p704_p7 = scmp.ge.s32.totalorder %s847_s17, 1  ;;  %p264_p8 = scmp.lt.s32.totalorder %s847_s17, 3 }
  0x20   : > { %p265_p9 = pnand %p704_p7, %p264_p8 }
  0x21   : > { %s271_s5 = sand.u32 (!%p265_p9), 1, %s839_s15   ;;  %vm428_vm0 = vcmask (!%p265_p9), 130048   ;;  %v821_v18 = vld [vmem:[%s1015_s0 + $0x4] ss:$8 sps:$4 sm:$0xff] (!%p265_p9)   ;;  %v824_v19 = vld [vmem:[%s1015_s0 + $0x14] ss:$8 sps:$4 sm:$0xff] (!%p265_p9)  }
  0x22   : > { %268 = sbr.rel (%p265_p9) target bundleno = 307 (0x133), region = 70  ;;  %v849_v20 = vmov (!%p265_p9), 0   ;;  %v490_v21 = vld [vmem:[%s1017_s2 + $0x10] sm:$0xff] (!%p265_p9)  ;;  %728 = vmatprep.mubr.msk.bf16.mxu0 (!%p265_p9), %vm428_vm0, %v821_v18  ;;  %v488_v22 = vld [vmem:[%s1017_s2] sm:$0xff] (!%p265_p9)  ;;  %729 = vmatprep.mubr.msk.bf16.mxu1 (!%p265_p9), %vm428_vm0, %v824_v19  ;;  %v491_v24 = vld [vmem:[%s1017_s2 + $0x18] sm:$0xff] (!%p265_p9)  ;;  %s705_s14 = sshll.u32 (!%p265_p9), %s271_s5, 5 }
  0x23   : > { %s764_s6 = smul.u32 (!%p265_p9), 144, %s271_s5  ;;  %791 = vset.pattern.permute.xlu1 (!%p265_p9), %v849_v20  ;;  %790 = vset.pattern.permute.xlu0 (!%p265_p9), %v849_v20  ;;  %v489_v27 = vld [vmem:[%s1017_s2 + $0x8] sm:$0xff] (!%p265_p9)  ;;  %v520_v35 = vld [vmem:[%s1018_s3] sm:$0xff] (!%p265_p9)  ;;  %v523_v36 = vld [vmem:[%s1018_s3 + $0x18] sm:$0xff] (!%p265_p9)  ;;  %s294_s15 = scalar_lea.vmem (!%p265_p9), [#allocation3], %s705_s14 }
  0x24   : > { %504 = vperm.xlu1 (!%p265_p9), %791, %v490_v21   ;;  %494 = vperm.xlu0 (!%p265_p9), %790, %v488_v22   ;;  %v521_v34 = vld [vmem:[%s1018_s3 + $0x8] sm:$0xff] (!%p265_p9)  ;;  %v522_v37 = vld [vmem:[%s1018_s3 + $0x10] sm:$0xff] (!%p265_p9) }
  0x25   : > { %s952_s20 = scalar_lea.vmem (!%p265_p9), [#allocation2], %s764_s6  ;;  %v819_v47 = vld [vmem:[%s1015_s0] ss:$8 sps:$4 sm:$0xff] (!%p265_p9)   ;;  %v822_v48 = vld [vmem:[%s1015_s0 + $0x10] ss:$8 sps:$4 sm:$0xff] (!%p265_p9)  }
  0x26   : > { %v792_v23 = vld [vmem:[%s952_s20 + $0x4] ss:$8 sps:$4 sm:$0xff] (!%p265_p9)   ;;  %v794_v25 = vld [vmem:[%s952_s20] ss:$8 sps:$4 sm:$0xff] (!%p265_p9)   ;;  %v795_v26 = vld [vmem:[%s952_s20 + $0x14] ss:$8 sps:$4 sm:$0xff] (!%p265_p9)  }
  0x27   : > { %435 = vmatprep.subr.bf16.mxu0 (!%p265_p9), %v792_v23  ;;  %745 = vmatprep.subr.bf16.mxu1 (!%p265_p9), %v792_v23  ;;  %v797_v28 = vld [vmem:[%s952_s20 + $0x10] ss:$8 sps:$4 sm:$0xff] (!%p265_p9)   ;;  %v798_v29 = vld [vmem:[%s952_s20 + $0x24] ss:$8 sps:$4 sm:$0xff] (!%p265_p9)   ;;  %v800_v30 = vld [vmem:[%s952_s20 + $0x20] ss:$8 sps:$4 sm:$0xff] (!%p265_p9)  }
  0x28   : > { %436 = vmatpush1.bf16.msra.mxu0 (!%p265_p9), %v794_v25  ;;  %754 = vmatpush1.bf16.msra.mxu1 (!%p265_p9), %v794_v25  ;;  %v801_v31 = vld [vmem:[%s952_s20 + $0x34] ss:$8 sps:$4 sm:$0xff] (!%p265_p9)   ;;  %v803_v32 = vld [vmem:[%s952_s20 + $0x30] ss:$8 sps:$4 sm:$0xff] (!%p265_p9)   ;;  %v804_v33 = vld [vmem:[%s952_s20 + $0x44] ss:$8 sps:$4 sm:$0xff] (!%p265_p9)  }
  0x29   : > { %437 = vmatprep.subr.bf16.mxu0 %v795_v26  ;;  %746 = vmatprep.subr.bf16.mxu1 %v795_v26  ;;  %v806_v38 = vld [vmem:[%s952_s20 + $0x40] ss:$8 sps:$4 sm:$0xff]   ;;  %v807_v39 = vld [vmem:[%s952_s20 + $0x54] ss:$8 sps:$4 sm:$0xff]   ;;  %v809_v40 = vld [vmem:[%s952_s20 + $0x50] ss:$8 sps:$4 sm:$0xff]  }
  0x2a   : > { %509 = vperm.xlu1 %791, %v491_v24   ;;  %499 = vperm.xlu0 %790, %v489_v27   ;;  %v810_v41 = vld [vmem:[%s952_s20 + $0x64] ss:$8 sps:$4 sm:$0xff]   ;;  %v812_v42 = vld [vmem:[%s952_s20 + $0x60] ss:$8 sps:$4 sm:$0xff]   ;;  %v813_v43 = vld [vmem:[%s952_s20 + $0x74] ss:$8 sps:$4 sm:$0xff]  }
  0x2b   : > { %v815_v44 = vld [vmem:[%s952_s20 + $0x70] ss:$8 sps:$4 sm:$0xff]   ;;  %v816_v45 = vld [vmem:[%s952_s20 + $0x84] ss:$8 sps:$4 sm:$0xff]   ;;  %v818_v46 = vld [vmem:[%s952_s20 + $0x80] ss:$8 sps:$4 sm:$0xff]  }
  0x2c   : > { %438 = vmatpush1.bf16.msra.mxu0 %v797_v28  ;;  %755 = vmatpush1.bf16.msra.mxu1 %v797_v28  ;;  %s744_s5 = sshll.u32 (%p905_p5), %s698_s18, 3 }
  0x2d   : > { %439 = vmatprep.subr.bf16.mxu0 %v798_v29  ;;  %747 = vmatprep.subr.bf16.mxu1 %v798_v29  ;;  %s597_s24 = scalar_lea.vmem (%p905_p5), %s1019_s4, %s744_s5 }
  0x2e   : > { %531 = vperm.xlu1 %791, %v521_v34   ;;  %526 = vperm.xlu0 %790, %v520_v35  }
  0x30   : > { %440 = vmatpush1.bf16.msra.mxu0 %v800_v30  ;;  %756 = vmatpush1.bf16.msra.mxu1 %v800_v30 }
  0x31   : > { %441 = vmatprep.subr.bf16.mxu0 %v801_v31  ;;  %748 = vmatprep.subr.bf16.mxu1 %v801_v31 }
  0x32   : > { %541 = vperm.xlu1 %791, %v523_v36   ;;  %536 = vperm.xlu0 %790, %v522_v37  }
  0x34   : > { %442 = vmatpush1.bf16.msra.mxu0 %v803_v32  ;;  %757 = vmatpush1.bf16.msra.mxu1 %v803_v32 }
  0x35   : > { %443 = vmatprep.subr.bf16.mxu0 %v804_v33  ;;  %749 = vmatprep.subr.bf16.mxu1 %v804_v33 }
  0x38   : > { %444 = vmatpush1.bf16.msra.mxu0 %v806_v38  ;;  %758 = vmatpush1.bf16.msra.mxu1 %v806_v38 }
  0x39   : > { %445 = vmatprep.subr.bf16.mxu0 %v807_v39  ;;  %750 = vmatprep.subr.bf16.mxu1 %v807_v39 }
  0x3c   : > { %446 = vmatpush1.bf16.msra.mxu0 %v809_v40  ;;  %759 = vmatpush1.bf16.msra.mxu1 %v809_v40 }
  0x3d   : > { %447 = vmatprep.subr.bf16.mxu0 %v810_v41  ;;  %751 = vmatprep.subr.bf16.mxu1 %v810_v41 }
  0x40   : > { %448 = vmatpush1.bf16.msra.mxu0 %v812_v42  ;;  %760 = vmatpush1.bf16.msra.mxu1 %v812_v42 }
  0x41   : > { %449 = vmatprep.subr.bf16.mxu0 %v813_v43  ;;  %752 = vmatprep.subr.bf16.mxu1 %v813_v43 }
  0x44   : > { %450 = vmatpush1.bf16.msra.mxu0 %v815_v44  ;;  %761 = vmatpush1.bf16.msra.mxu1 %v815_v44 }
  0x45   : > { %451 = vmatprep.subr.bf16.mxu0 %v816_v45  ;;  %753 = vmatprep.subr.bf16.mxu1 %v816_v45 }
  0x48   : > { %452 = vmatpush1.bf16.msra.mxu0 %v818_v46  ;;  %762 = vmatpush1.bf16.msra.mxu1 %v818_v46 }
  0x4b   : > { %468 = vmatmul.mubr.bf16.vlgmr.msra.gmra.mrb[0].mxu0 %v819_v47  ;;  %478 = vmatmul.mubr.bf16.vlgmr.msra.gmra.mrb[0].mxu1 %v822_v48 }
  0xa3   : > { %v495_v49 = vpop.permute.xlu0 %494  ;;  %v505_v50 = vpop.permute.xlu1 %504 }
  0xa9   : > { %v500_v51 = vpop.permute.xlu0 %499  ;;  %v510_v52 = vpop.permute.xlu1 %509 }
  0xad   : > { %v527_v53 = vpop.permute.xlu0 %526  ;;  %v532_v54 = vpop.permute.xlu1 %531 }
  0xb1   : > { %v537_v55 = vpop.permute.xlu0 %536  ;;  %v542_v8 = vpop.permute.xlu1 %541 }
 0x11e   : > { %v469_v56 = vpop.f32.mrb[0].mxu0  ;;  %v479_v57 = vpop.f32.mrb[0].mxu1 }
 0x11f   : > { %v512_v58 = vmul.f32 %v495_v49, %v469_v56  ;;  %v516_v59 = vmul.f32 %v505_v50, %v479_v57  ;;  %v471_v60 = vpop.f32.mrb[1].mxu0  ;;  %v481_v61 = vpop.f32.mrb[1].mxu1 }
 0x120   : > { %v513_v62 = vmul.f32 %v495_v49, %v471_v60  ;;  %v517_v63 = vmul.f32 %v505_v50, %v481_v61  ;;  %v473_v0 = vpop.f32.mrb[2].mxu0  ;;  %v483_v1 = vpop.f32.mrb[2].mxu1 }
 0x121   : > { %v544_v2 = vadd.f32 %v527_v53, %v512_v58  ;;  %v548_v3 = vadd.f32 %v537_v55, %v516_v59  ;;  %v514_v4 = vmul.f32 %v500_v51, %v473_v0  ;;  %v518_v5 = vmul.f32 %v510_v52, %v483_v1  ;;  %v475_v6 = vpop.f32.mrb[3].mxu0  ;;  %v485_v7 = vpop.f32.mrb[3].mxu1 }
 0x122   : > { %v545_v9 = vadd.f32 %v527_v53, %v513_v62  ;;  %v549_v10 = vadd.f32 %v537_v55, %v517_v63  ;;  %v515_v11 = vmul.f32 %v500_v51, %v475_v6  ;;  %v519_v12 = vmul.f32 %v510_v52, %v485_v7 }
 0x123   : > { %v552_v13 = vmax.f32 %v544_v2, 0.0  ;;  %v556_v14 = vmax.f32 %v548_v3, 0.0  ;;  %v546_v15 = vadd.f32 %v532_v54, %v514_v4  ;;  %v550_v16 = vadd.f32 %v542_v8, %v518_v5 }
 0x124   : > { %v553_v17 = vmax.f32 %v545_v9, 0.0  ;;  %v557_v18 = vmax.f32 %v549_v10, 0.0  ;;  %v547_v19 = vadd.f32 %v532_v54, %v515_v11  ;;  %v551_v20 = vadd.f32 %v542_v8, %v519_v12  ;;  %594 = sbr.rel (!%p905_p5) target bundleno = 307 (0x133), region = 78 }
 0x125   : > { %v554_v21 = vmax.f32 %v546_v15, 0.0  ;;  %v558_v22 = vmax.f32 %v550_v16, 0.0 }
 0x126   : > { %v740_v23 = vpack.c.bf16 %v553_v17, %v552_v13  ;;  %v742_v24 = vpack.c.bf16 %v557_v18, %v556_v14  ;;  %v555_v25 = vmax.f32 %v547_v19, 0.0  ;;  %v559_v26 = vmax.f32 %v551_v20, 0.0 }
 0x128   : > { %584 = vst [vmem:[%s294_s15] sm:$0xff] %v740_v23  ;;  %586 = vst [vmem:[%s294_s15 + $0x10] sm:$0xff] %v742_v24  ;;  %v741_v27 = vpack.c.bf16 %v555_v25, %v554_v21  ;;  %v743_v28 = vpack.c.bf16 %v559_v26, %v558_v22 }
 0x12a   : > { %585 = vst [vmem:[%s294_s15 + $0x8] sm:$0xff] %v741_v27  ;;  %587 = vst [vmem:[%s294_s15 + $0x18] sm:$0xff] %v743_v28 }
 0x12f   : > { %v631_v29 = vld [vmem:[%s294_s15] sm:$0xff]  ;;  %v635_v31 = vld [vmem:[%s294_s15 + $0x10] sm:$0xff] }
 0x130   : > { %632 = vst [vmem:[%s597_s24] sm:$0xff] %v631_v29  ;;  %636 = vst [vmem:[%s597_s24 + $0x20] sm:$0xff] %v635_v31 }
 0x131   : > { %v633_v30 = vld [vmem:[%s294_s15 + $0x8] sm:$0xff]  ;;  %v637_v32 = vld [vmem:[%s294_s15 + $0x18] sm:$0xff] }
 0x132   : > { %634 = vst [vmem:[%s597_s24 + $0x10] sm:$0xff] %v633_v30  ;;  %638 = vst [vmem:[%s597_s24 + $0x30] sm:$0xff] %v637_v32 }
 0x133 PF: > { %p11_p10 = scmp.ge.s32.totalorder %s892_s19, 4   ;;  %s1021_s15 = smov %s843_s16 }
 0x134   : > { %s1022_s16 = smov %s903_s22  ;;  %s1023_s17 = smov %s892_s19 }
 0x135   :  { %13 = sbr.rel (!%p11_p10) target bundleno = 2 (0x2), region = 147 }

// kernel: position_attention_forward.17
= control target key start
LH: loop header
LB: loop body
LE: loop exit
PB: predicated region body
PF: predicated region fallthrough
CT: control target
= control target key end

     0   :  { %10 = vsyncpa [#allocation3], 0  ;;  %s960_s0 = inlined_call_operand.vmem [shape: bf16[8,32], index: 0, kind: input, shape index: {}]   ;;  %s961_s1 = inlined_call_operand.vmem [shape: bf16[2,32,256], index: 1, kind: input, shape index: {}]   ;;  %s962_s2 = inlined_call_operand.vmem [shape: bf16[2,256,32], index: 2, kind: input, shape index: {}]   ;;  %s963_s3 = inlined_call_operand.hbm [shape: f32[2,8,32], index: 3, kind: output, shape index: {0}]   ;;  %s964_s4 = inlined_call_operand.vmem [shape: f32[2,8,256], index: 4, kind: output, shape index: {1}]  }
   0x1   :  { %12 = vsyncpa [#allocation3 + $0x1], 0  ;;  %s826_s15 = smov 0   ;;  %s828_s16 = smov 0  }
   0x2   :  { %s830_s17 = smov 0   ;;  %s832_s18 = smov 0  }
   0x3 LB: > { %s847_s19 = sadd.s32 4294967295, %s797_s18   ;;  %s606_s20 = sadd.s32 4294967294, %s797_s18   ;;  %s797_s18 = sphi %s832_s18, %s970_s18   ;;  %s793_s17 = sphi %s830_s17, %s969_s17   ;;  %s789_s16 = sphi %s828_s16, %s968_s16   ;;  %s785_s15 = sphi %s826_s15, %s967_s15  }
   0x4   : > { %s851_s21 = sadd.s32 1, %s797_s18   ;;  %s98_s22 = sadd.s32 1, %s793_s17 }
   0x5   : > { %s95_s23 = ssub.s32 %s797_s18, %s851_s21  ;;  %p108_p0 = scmp.ne.s32.totalorder %s793_s17, %s789_s16 }
   0x6   : > { %p96_p1 = scmp.eq.s32.totalorder %s95_s23, 0  ;;  %p109_p2 = scmp.eq.s32.totalorder %s847_s19, 1 }
   0x7   : > { %p114_p3 = scmp.ne.s32.totalorder %s789_s16, %s785_s15  ;;  %p115_p4 = scmp.eq.s32.totalorder %s606_s20, 1 }
   0x8   : > { %s862_s24 = scalar_select %p96_p1, %s793_s17, %s98_s22  }
   0x9   : > { %p864_p5 = por %p109_p2, %p108_p0  ;;  %p868_p6 = por %p115_p4, %p114_p3 }
   0xa   : > { %p609_p7 = scmp.ge.s32.totalorder %s797_s18, 1  ;;  %p178_p8 = scmp.lt.s32.totalorder %s797_s18, 3 }
   0xc   : > { %p179_p9 = pnand %p609_p7, %p178_p8 }
   0xd   : > { %p214_p10 = scmp.lt.s32.totalorder (!%p179_p9), %s847_s19, 1  ;;  %v799_v0 = vmov (!%p179_p9), 0   ;;  %vm255_vm0 = vcmask (!%p179_p9), 261120   ;;  %v230_v5 = vld [vmem:[%s960_s0] sm:$0xf] (!%p179_p9)  ;;  %s204_s22 = sand.u32 (!%p179_p9), 1, %s789_s16  }
   0xe   : > { %182 = sbr.rel (%p179_p9) target bundleno = 796 (0x31c), region = 32  ;;  %291 = vmatprep.mubr.bf16.mxu0 (!%p179_p9), %v799_v0  ;;  %s610_s23 = sshll.u32 (!%p179_p9), %s204_s22, 3 }
   0xf   : > { %s800_s8 = smov (!%p179_p9), [#allocation2]  }
  0x15   : > { %s876_s27 = scalar_select %p214_p10, %s847_s19, 1 }
  0x17   : > { %s642_s28 = sshll.u32 %s876_s27, 5  ;;  %s643_s29 = sshll.u32 %s876_s27, 7 }
  0x18   : > { %s218_s6 = scalar_lea.vmem %s961_s1, %s642_s28  ;;  %s886_s9 = scalar_lea.vmem %s962_s2, %s643_s29 }
  0x19   : > { %v707_v1 = vld [vmem:[%s218_s6 + $0x4] ss:$8 sps:$4 sm:$0xff]   ;;  %v709_v2 = vld [vmem:[%s218_s6] ss:$8 sps:$4 sm:$0xff]   ;;  %v710_v3 = vld [vmem:[%s218_s6 + $0x14] ss:$8 sps:$4 sm:$0xff]  }
  0x1a   : > { %259 = vmatprep.subr.bf16.mxu0 %v707_v1  ;;  %v712_v4 = vld [vmem:[%s218_s6 + $0x10] ss:$8 sps:$4 sm:$0xff]   ;;  %v713_v11 = vld [vmem:[%s886_s9 + $0x40] sm:$0xff]   ;;  %v715_v13 = vld [vmem:[%s886_s9 + $0x48] sm:$0xff]   ;;  %s644_s12 = sshll.u32 %s876_s27, 4  ;;  %s639_s28 = sshll.u32 %s847_s19, 7 }
  0x1b   : > { %260 = vmatpush1.bf16.msra.mxu0 %v709_v2  ;;  %v714_v12 = vld [vmem:[%s886_s9] sm:$0xff]   ;;  %645 = vmatprep.subr.bf16.mxu1 %v713_v11  ;;  %v716_v14 = vld [vmem:[%s886_s9 + $0x8] sm:$0xff]   ;;  %v717_v15 = vld [vmem:[%s886_s9 + $0x50] sm:$0xff]   ;;  %s228_s20 = scalar_lea.vmem %s964_s4, %s644_s12  ;;  %s206_s29 = scalar_lea.vmem [#allocation2], %s610_s23 }
  0x1c   : > { %261 = vmatprep.subr.bf16.mxu0 %v710_v3  ;;  %646 = vmatpush3.bf16.msra.mxu1 %v714_v12  ;;  %v718_v16 = vld [vmem:[%s886_s9 + $0x10] sm:$0xff]   ;;  %v719_v17 = vld [vmem:[%s886_s9 + $0x58] sm:$0xff]   ;;  %v721_v27 = vld [vmem:[%s886_s9 + $0x60] sm:$0xff]   ;;  %s507_s30 = sshll.u32 %s206_s29, 4  ;;  %s917_s6 = scalar_lea.hbm %s963_s3, %s639_s28  ;;  %s919_s30 = int_to_ptr.vmem [resolvable:$true] %s507_s30 }
  0x1d   : > { %647 = vmatprep.subr.bf16.mxu1 %v715_v13  ;;  %v720_v18 = vld [vmem:[%s886_s9 + $0x18] sm:$0xff]   ;;  %v722_v28 = vld [vmem:[%s886_s9 + $0x20] sm:$0xff]   ;;  %v723_v29 = vld [vmem:[%s886_s9 + $0x68] sm:$0xff]   ;;  %s489_s19 = scalar_lea.sflag [#allocation3], %s204_s22  ;;  %s735_s7 = scalar_lea.vmem %s919_s30, 128 }
  0x1e   : > { %v724_v30 = vld [vmem:[%s886_s9 + $0x28] sm:$0xff]   ;;  %v725_v31 = vld [vmem:[%s886_s9 + $0x70] sm:$0xff]   ;;  %v727_v33 = vld [vmem:[%s886_s9 + $0x78] sm:$0xff]   ;;  %p736_p11 = scmp.ne.s32.totalorder %s919_s30, %s735_s7 }
  0x1f   : > { %262 = vmatpush1.bf16.msra.mxu0 %v712_v4  ;;  %v726_v32 = vld [vmem:[%s886_s9 + $0x30] sm:$0xff]   ;;  %v728_v34 = vld [vmem:[%s886_s9 + $0x38] sm:$0xff]   ;;  %s739_s9 = sshll.u32 %s800_s8, 4  ;;  %s740_s9 = int_to_ptr.vmem [resolvable:$false] %s739_s9 }
  0x20   : > { %648 = vmatpush3.bf16.msra.mxu1 %v716_v14  ;;  %p737_p12 = pnand %p736_p11, %p864_p5  ;;  %s741_s10 = scalar_lea.vmem %s740_s9, 256 }
  0x21   : > { %649 = vmatprep.subr.bf16.mxu1 %v717_v15  ;;  %p742_p0 = scmp.lt.s32.totalorder %s919_s30, %s740_s9  ;;  %p743_p1 = scmp.lt.s32.totalorder %s741_s10, %s735_s7 }
  0x22   : > { %621 = vmatmul.mubr.msk.bf16.vlgmr.msra.gmra.mrb[0].mxu0 %vm255_vm0, %v230_v5  ;;  %p738_p13 = pneg %p737_p12 }
  0x23   : > { %p744_p2 = por %p743_p1, %p742_p0 }
  0x24   : > { %650 = vmatpush3.bf16.msra.mxu1 %v718_v16 }
  0x25   : > { %651 = vmatprep.subr.bf16.mxu1 %v719_v17  ;;  %p745_p3 = pnand %p744_p2, %p738_p13 }
  0x28   : > { %652 = vmatpush3.bf16.msra.mxu1 %v720_v18 }
  0x29   : > { %653 = vmatprep.subr.bf16.mxu1 %v721_v27 }
  0x2c   : > { %654 = vmatpush3.bf16.msra.mxu1 %v722_v28 }
  0x2d   : > { %655 = vmatprep.subr.bf16.mxu1 %v723_v29 }
  0x30   : > { %656 = vmatpush3.bf16.msra.mxu1 %v724_v30 }
  0x31   : > { %657 = vmatprep.subr.bf16.mxu1 %v725_v31 }
  0x34   : > { %658 = vmatpush3.bf16.msra.mxu1 %v726_v32 }
  0x35   : > { %659 = vmatprep.subr.bf16.mxu1 %v727_v33 }
  0x38   : > { %660 = vmatpush3.bf16.msra.mxu1 %v728_v34 }
  0xf5   : > { %v293_v6 = vpop.f32.mrb[0].mxu0 }
  0xf6   : > { %v295_v7 = vpop.f32.mrb[1].mxu0 }
  0xf7   : > { %v297_v8 = vpop.f32.mrb[2].mxu0  ;;  %v300_v9 = vmax.f32 %v293_v6, %v295_v7 }
  0xf8   : > { %v298_v10 = vpop.f32.mrb[3].mxu0 }
  0xf9   : > { %301 = vmax.xlane.f32.xlu0 %v300_v9 }
 0x186   : > { %v302_v19 = vpop.xlane.xlu0 %301 }
 0x187   : > { %v303_v20 = vsub.f32 %v293_v6, %v302_v19  ;;  %v304_v21 = vsub.f32 %v295_v7, %v302_v19 }
 0x189   : > { %v305_v22 = vmul.f32 1.442695, %v303_v20  ;;  %v307_v23 = vmul.f32 1.442695, %v304_v21 }
 0x18b   : > { %729 = vpow2.f32 %v305_v22 }
 0x18c   : > { %731 = vpow2.f32 %v307_v23 }
 0x195   : > { %v730_v24 = vpop.eup %729 }
 0x196   : > { %v732_v25 = vpop.eup %731 }
 0x197   : > { %v309_v26 = vadd.f32 %v732_v25, %v730_v24 }
 0x199   : > { %310 = vadd.xlane.f32.xlu0 %v309_v26 }
 0x226   : > { %v311_v35 = vpop.xlane.xlu0 %310 }
 0x227   : > { %733 = vrcp.f32 %v311_v35 }
 0x231   : > { %v734_v36 = vpop.eup %733 }
 0x232   : > { %v313_v37 = vmul.f32 %v734_v36, %v730_v24  ;;  %v314_v38 = vmul.f32 %v734_v36, %v732_v25 }
 0x234   : > { %v316_v39 = vpack.c.bf16 %v314_v38, %v314_v38  ;;  %486 = vst [vmem:[%s228_s20] sm:$0xff] %v313_v37  ;;  %487 = vst [vmem:[%s228_s20 + $0x8] sm:$0xff] %v314_v38  ;;  %v315_v40 = vpack.c.bf16 %v313_v37, %v313_v37 }
 0x236   : > { %477 = vmatprep.mubr.bf16.mxu1 %v316_v39 }
 0x237   : > { %478 = vmatmul.mubr.bf16.vlgmr.msra.gmra.mrb[0].mxu1 %v315_v40 }
 0x30a   : > { %v661_v41 = vpop.f32.mrb[0].mxu1 }
 0x30b   : > { %v662_v42 = vpop.f32.mrb[1].mxu1 }
 0x30c   : > { %v663_v43 = vadd.f32 %v662_v42, %v661_v41  ;;  %v664_v44 = vpop.f32.mrb[2].mxu1 }
 0x30d   : > { %v665_v45 = vpop.f32.mrb[3].mxu1 }
 0x30e   : > { %485 = vst.msk [vmem:[%s206_s29] sm:$0xff] %vm255_vm0, %v663_v43 }
 0x30f   : > { %748 = shalt.err (!%p745_p3)
}
 0x310   : > { %s749_s11 = scalar_lea.hbm %s917_s6, 128  ;;  %s753_s14 = scalar_lea.hbm %s963_s3, 256 }
 0x311   : > { %p750_p4 = scmp.ne.s32.totalorder %s917_s6, %s749_s11  ;;  %p754_p9 = scmp.lt.u32.totalorder %s917_s6, %s963_s3 }
 0x312   : > { %p755_p10 = scmp.lt.u32.totalorder %s753_s14, %s749_s11  ;;  %p757_p12 = scmp.lt.u32.totalorder %s749_s11, %s917_s6 }
 0x313   : > { %p751_p7 = pnand %p750_p4, %p864_p5 }
 0x314   : > { %p756_p11 = por %p755_p10, %p754_p9 }
 0x315   : > { %p752_p8 = pneg %p751_p7 }
 0x316   : > { %p758_p13 = por %p757_p12, %p756_p11 }
 0x318   : > { %p759_p0 = pnand %p758_p13, %p752_p8 }
 0x31a   : > { %762 = shalt.err (!%p759_p0)
}
 0x31b   : > { %667 = dma.vmem_to_hbm [thread:$0]  (%p864_p5), %s919_s30, 128, %s917_s6, %s489_s19  }
 0x31c PF: > { %p673_p1 = scmp.ge.s32.totalorder %s797_s18, 2  ;;  %s522_s23 = sand.u32 1, %s785_s15  }
 0x31d   : > { %s523_s28 = scalar_lea.sflag [#allocation3], %s522_s23 }
 0x31e   : > { %p670_p2 = pnand %p673_p1, %p868_p6 }
 0x320   : > { %780 = dma.done.wait (!%p670_p2), %s523_s28, 128  }
 0x321   : > { %782 = vsyncadd (!%p670_p2), %s523_s28, 4294967168  ;;  %p15_p3 = scmp.ge.s32.totalorder %s851_s21, 4   ;;  %s967_s15 = smov %s789_s16 }
 0x322   : > { %s968_s16 = smov %s793_s17  ;;  %s969_s17 = smov %s862_s24 }
 0x323   : > { %s970_s18 = smov %s851_s21  ;;  %17 = sbr.rel (!%p15_p3) target bundleno = 3 (0x3), region = 82 }
 0x32a   :  { %536 = vsyncpa [#allocation3], 1 }
 0x32b   :  { %538 = vsyncpa [#allocation3 + $0x1], 1 }

</bundles_post_ra>
